<compile_context>
chip_gen: v6e
topology: v6e:2x2x1
jax: 0.10.0
libtpu: 0.0.40
codegen_flags: <defaults>
</compile_context>

<pallas_src>
import math

import jax
import jax.numpy as jnp
from jax import lax
from jax.experimental import pallas as pl
from jax.experimental.pallas import tpu as pltpu

# ---- synthetic model configuration (small shapes) ----
B = 2            # batch
S = 8            # sequence length
H = 32           # bert hidden size
NUM_HEADS = 2
HEAD_DIM = H // NUM_HEADS
INTER = 64       # bert intermediate size
NUM_LAYERS = 2
VOCAB = 100
DRUG_DIM = 16    # drug_enc_hid_dim
LN_EPS = 1e-12
NEG_INF = -1e9
BS = B * S
VOCAB_PAD = ((VOCAB + 127) // 128) * 128      # lane-pad vocab for the one-hot gather matmul

assert H % 8 == 0 and HEAD_DIM % 8 == 0 and INTER % 8 == 0
assert DRUG_DIM % 8 == 0 and BS % 8 == 0

# ---- row offsets inside the packed weight slabs (every segment starts on a %8 row) ----
# slab_h: trailing dim H
SH_WORD = 0                                    # (VOCAB_PAD, H) zero-padded word embeddings
SH_POS = SH_WORD + VOCAB_PAD                   # (BS, H) pos+type embeddings, tiled per batch
SH_EMB_LN = SH_POS + BS                        # rows: 0=gamma, 1=beta (segment padded to 8)
SH_LAYER0 = SH_EMB_LN + 8
SH_WO = 0                                      # per-layer sub-offsets
SH_WF = NUM_HEADS * HEAD_DIM
SH_MISC = SH_WF + INTER                        # rows: bo, ln1g, ln1b, bf, ln2g, ln2b (pad to 8)
SH_LAYER_ROWS = SH_MISC + 8
SH_CLS = SH_LAYER0 + NUM_LAYERS * SH_LAYER_ROWS    # w1t (H rows), then w1d (DRUG_DIM rows)
SH_CLS_MISC = SH_CLS + H + DRUG_DIM            # rows: b1, w2^T, b2 (lane-broadcast) (pad to 8)
SH_ROWS = SH_CLS_MISC + 8

# slab_hd: trailing dim HEAD_DIM; per-head q/k/v projection blocks (H rows each), then bias rows
HD_BQ = NUM_LAYERS * 3 * NUM_HEADS * H
HD_ROWS = ((HD_BQ + NUM_LAYERS * 3 * NUM_HEADS + 7) // 8) * 8

# slab_inter: trailing dim INTER; per layer: wi (H rows) then bi (1 row), padded to 8
SI_LAYER_ROWS = H + 8
SI_ROWS = NUM_LAYERS * SI_LAYER_ROWS


def _gelu(x):
    # TODO(synk): PyTorch nn.GELU() uses exact erf-GELU; tanh approximation used
    # here because lax.erf is not guaranteed to lower in Mosaic.
    return jax.nn.gelu(x, approximate=True)


def _layernorm(x, gamma, beta):
    mean = jnp.mean(x, axis=-1, keepdims=True)
    var = jnp.mean((x - mean) ** 2, axis=-1, keepdims=True)
    return (x - mean) * lax.rsqrt(var + LN_EPS) * gamma + beta


# ---------------- single fused Pallas kernel ----------------
def fused_forward_kernel(ids_ref, mask_ref, drug_ref,     # data: (BS,1) i32, (1,BS) f32, (B,DRUG)
                         sh_ref, hd_ref, si_ref,          # packed weight slabs
                         out_ref):                        # (B, 1) logits
    f32 = jnp.float32

    # ---- BERT embeddings: one-hot row gather on the MXU, +pos/type, LayerNorm ----
    ids = ids_ref[...]                                                   # (BS, 1) int32
    one_hot = (ids == lax.broadcasted_iota(jnp.int32, (BS, VOCAB_PAD), 1)).astype(f32)
    x = jnp.dot(one_hot, sh_ref[SH_WORD:SH_WORD + VOCAB_PAD, :],
                preferred_element_type=f32)                              # (BS, H)
    x = x + sh_ref[SH_POS:SH_POS + BS, :]
    x = _layernorm(x, sh_ref[SH_EMB_LN:SH_EMB_LN + 1, :],
                   sh_ref[SH_EMB_LN + 1:SH_EMB_LN + 2, :])
    # emb_dropout / all nn.Dropout layers: identity at inference.

    # ---- additive attention bias: key-padding mask merged with block-diagonal batch mask ----
    r = lax.broadcasted_iota(jnp.int32, (BS, BS), 0)
    c = lax.broadcasted_iota(jnp.int32, (BS, BS), 1)
    same_batch = None
    for b in range(B):   # static tiny loop of iota compares (avoids int div/shift lowering)
        blk = ((r >= b * S) & (r < (b + 1) * S)) & ((c >= b * S) & (c < (b + 1) * S))
        same_batch = blk if same_batch is None else (same_batch | blk)
    key_bias = (1.0 - mask_ref[...]) * NEG_INF                           # (1, BS)
    bias = jnp.where(same_batch, key_bias, NEG_INF)                      # (BS, BS)

    scale = 1.0 / math.sqrt(HEAD_DIM)

    # ---- transformer encoder layers (static unroll) ----
    for l in range(NUM_LAYERS):
        lh = SH_LAYER0 + l * SH_LAYER_ROWS
        misc = lh + SH_MISC
        attn = jnp.zeros((BS, H), f32)
        for h in range(NUM_HEADS):
            qi = (l * 3 + 0) * NUM_HEADS + h
            ki = (l * 3 + 1) * NUM_HEADS + h
            vi = (l * 3 + 2) * NUM_HEADS + h
            q = (jnp.dot(x, hd_ref[qi * H:(qi + 1) * H, :], preferred_element_type=f32)
                 + hd_ref[HD_BQ + qi:HD_BQ + qi + 1, :])
            k = (jnp.dot(x, hd_ref[ki * H:(ki + 1) * H, :], preferred_element_type=f32)
                 + hd_ref[HD_BQ + ki:HD_BQ + ki + 1, :])
            v = (jnp.dot(x, hd_ref[vi * H:(vi + 1) * H, :], preferred_element_type=f32)
                 + hd_ref[HD_BQ + vi:HD_BQ + vi + 1, :])
            # Batch-fused block-diagonal scores: one softmax / one p@v per head.
            sc = lax.dot_general(q, k, (((1,), (1,)), ((), ())),
                                 preferred_element_type=f32) * scale + bias      # (BS, BS)
            sc = sc - jnp.max(sc, axis=-1, keepdims=True)
            p = jnp.exp(sc)
            p = p * pl.reciprocal(jnp.sum(p, axis=-1, keepdims=True), approx=True)
            ctx = jnp.dot(p, v, preferred_element_type=f32)                      # (BS, HEAD_DIM)
            # Fold "concat heads" into per-head output projections (accumulating matmuls).
            wo_h = sh_ref[lh + SH_WO + h * HEAD_DIM:lh + SH_WO + (h + 1) * HEAD_DIM, :]
            attn = attn + jnp.dot(ctx, wo_h, preferred_element_type=f32)
        attn = attn + sh_ref[misc + 0:misc + 1, :]                               # + bo
        x = _layernorm(x + attn, sh_ref[misc + 1:misc + 2, :],
                       sh_ref[misc + 2:misc + 3, :])
        si = l * SI_LAYER_ROWS
        ffn = _gelu(jnp.dot(x, si_ref[si:si + H, :], preferred_element_type=f32)
                    + si_ref[si + H:si + H + 1, :])
        ffn = (jnp.dot(ffn, sh_ref[lh + SH_WF:lh + SH_WF + INTER, :],
                       preferred_element_type=f32)
               + sh_ref[misc + 3:misc + 4, :])
        x = _layernorm(x + ffn, sh_ref[misc + 4:misc + 5, :],
                       sh_ref[misc + 5:misc + 6, :])

    # ---- classifier head over concat([CLS, drug]) ----
    # torch.stack([elem[0, :] ...]) == rows {0, S, 2S, ...}: one-hot selection matmul,
    # no per-row sublane slice + concatenate.
    sel = (lax.broadcasted_iota(jnp.int32, (B, BS), 1)
           == lax.broadcasted_iota(jnp.int32, (B, BS), 0) * S).astype(f32)
    cls = jnp.dot(sel, x, preferred_element_type=f32)                            # (B, H)
    h1 = (jnp.dot(_gelu(cls), sh_ref[SH_CLS:SH_CLS + H, :], preferred_element_type=f32)
          + jnp.dot(_gelu(drug_ref[...]), sh_ref[SH_CLS + H:SH_CLS + H + DRUG_DIM, :],
                    preferred_element_type=f32)
          + sh_ref[SH_CLS_MISC + 0:SH_CLS_MISC + 1, :])
    # Dropout identity; second GELU; final Linear(H, 1) -> raw logit per example.
    w2t = sh_ref[SH_CLS_MISC + 1:SH_CLS_MISC + 2, :]                             # (1, H) = w2^T
    logit = jnp.sum(_gelu(h1) * w2t, axis=-1, keepdims=True)                     # (B, 1)
    # b2 is stored lane-broadcast across its (1, H) row; lane-max recovers the scalar
    # without a width-1 lane slice.
    b2 = jnp.max(sh_ref[SH_CLS_MISC + 2:SH_CLS_MISC + 3, :], axis=-1, keepdims=True)
    out_ref[...] = logit + b2


def _full_spec(arr):
    """Whole-array VMEM block; ndim bound eagerly (no late-binding lambda bug)."""
    nd = arr.ndim
    return pl.BlockSpec(arr.shape, lambda i: (0,) * nd)


def forward(inputs, attention_mask, drug_embeddings, pk):
    ids = inputs.astype(jnp.int32).reshape(BS, 1)
    mask = attention_mask.astype(jnp.float32).reshape(1, BS)
    args = (ids, mask, drug_embeddings.astype(jnp.float32),
            pk["slab_h"], pk["slab_hd"], pk["slab_inter"])
    return pl.pallas_call(
        fused_forward_kernel,
        out_shape=jax.ShapeDtypeStruct((B, 1), jnp.float32),
        grid=(1,),                               # single program; everything resident in VMEM
        in_specs=[_full_spec(a) for a in args],
        out_specs=pl.BlockSpec((B, 1), lambda i: (0, 0)),
        compiler_params=pltpu.CompilerParams(
            # Keep the (tiny) single-step grid on one TensorCore (v7x megacore).
            dimension_semantics=("arbitrary",)),
    )(*args)


# ---------------- parameter init (deterministic, synthetic) ----------------
def init_params(key):
    keys = iter(jax.random.split(key, 128))

    def w(shape, scale=0.02):
        return scale * jax.random.normal(next(keys), shape, jnp.float32)

    params = {
        "word_emb": w((VOCAB, H)),
        "pos_emb": w((S, H)),
        "type_emb": w((2, H)),
        "emb_ln_g": jnp.ones((H,), jnp.float32),
        "emb_ln_b": jnp.zeros((H,), jnp.float32),
        "layers": [],
        "classifier": {
            "w1t": w((H, H)),          # first H rows of Linear(H+DRUG_DIM, H).weight.T
            "w1d": w((DRUG_DIM, H)),   # last DRUG_DIM rows
            "b1": jnp.zeros((H,), jnp.float32),
            "w2": w((H, 1)),
            "b2": jnp.zeros((1,), jnp.float32),
        },
    }
    for _ in range(NUM_LAYERS):
        params["layers"].append({
            "wq": w((H, H)), "bq": jnp.zeros((H,), jnp.float32),
            "wk": w((H, H)), "bk": jnp.zeros((H,), jnp.float32),
            "wv": w((H, H)), "bv": jnp.zeros((H,), jnp.float32),
            "wo": w((H, H)), "bo": jnp.zeros((H,), jnp.float32),
            "ln1_g": jnp.ones((H,), jnp.float32),
            "ln1_b": jnp.zeros((H,), jnp.float32),
            "wi": w((H, INTER)), "bi": jnp.zeros((INTER,), jnp.float32),
            "wf": w((INTER, H)), "bf": jnp.zeros((H,), jnp.float32),
            "ln2_g": jnp.ones((H,), jnp.float32),
            "ln2_b": jnp.zeros((H,), jnp.float32),
        })
    return params


def pack_params(params):
    """Host-side, once: pack all weights into three trailing-dim-grouped slabs with
    8-row-aligned segments so the kernel only does free static row slices."""
    f32 = jnp.float32
    row = lambda v: v[None, :]
    zeros = lambda n, d: jnp.zeros((n, d), f32)
    cp = params["classifier"]

    # ---- slab_h: everything with trailing dim H ----
    segs = [
        params["word_emb"], zeros(VOCAB_PAD - VOCAB, H),
        # position + token-type(=0) embeddings are input-independent: pre-added, tiled per batch.
        jnp.tile(params["pos_emb"] + params["type_emb"][0][None, :], (B, 1)),
        row(params["emb_ln_g"]), row(params["emb_ln_b"]), zeros(6, H),
    ]
    for lp in params["layers"]:
        segs += [
            lp["wo"],                       # (H, H): head h -> rows [h*HEAD_DIM, (h+1)*HEAD_DIM)
            lp["wf"],                       # (INTER, H)
            row(lp["bo"]), row(lp["ln1_g"]), row(lp["ln1_b"]),
            row(lp["bf"]), row(lp["ln2_g"]), row(lp["ln2_b"]), zeros(2, H),
        ]
    segs += [
        cp["w1t"], cp["w1d"],
        row(cp["b1"]),
        cp["w2"].T,                                   # (1, H)
        jnp.full((1, H), cp["b2"][0], f32),           # b2 broadcast across lanes
        zeros(5, H),
    ]
    slab_h = jnp.concatenate(segs, axis=0)
    assert slab_h.shape == (SH_ROWS, H)

    # ---- slab_hd: per-head q/k/v projection blocks, then their bias rows ----
    blocks, brows = [], []
    for lp in params["layers"]:
        for name_w, name_b in (("wq", "bq"), ("wk", "bk"), ("wv", "bv")):
            for h in range(NUM_HEADS):
                lo, hi = h * HEAD_DIM, (h + 1) * HEAD_DIM
                blocks.append(lp[name_w][:, lo:hi])           # (H, HEAD_DIM)
                brows.append(lp[name_b][lo:hi][None, :])      # (1, HEAD_DIM)
    pad = HD_ROWS - (HD_BQ + len(brows))
    slab_hd = jnp.concatenate(blocks + brows + [zeros(pad, HEAD_DIM)], axis=0)
    assert slab_hd.shape == (HD_ROWS, HEAD_DIM)

    # ---- slab_inter: per layer wi then bi ----
    segs = []
    for lp in params["layers"]:
        segs += [lp["wi"], row(lp["bi"]), zeros(SI_LAYER_ROWS - H - 1, INTER)]
    slab_inter = jnp.concatenate(segs, axis=0)
    assert slab_inter.shape == (SI_ROWS, INTER)

    return {"slab_h": slab_h, "slab_hd": slab_hd, "slab_inter": slab_inter}


if __name__ == "__main__":
    key = jax.random.PRNGKey(0)
    k_params, k_tok, k_drug = jax.random.split(key, 3)

    params = init_params(k_params)
    packed = pack_params(params)
    inputs = jax.random.randint(k_tok, (B, S), 0, VOCAB, dtype=jnp.int32)
    attention_mask = jnp.ones((B, S), dtype=jnp.int32)
    drug_embeddings = jax.random.normal(k_drug, (B, DRUG_DIM), dtype=jnp.float32)

    proba = jax.jit(forward)(inputs, attention_mask, drug_embeddings, packed)
    proba = jax.block_until_ready(proba)
    assert proba.shape == (B, 1) and proba.dtype == jnp.float32
    print("KERNEL_OK")
</pallas_src>

<mosaic_0001>
module attributes {stable_mosaic.version = 11 : i64} {
  func.func @fused_forward_kernel(%arg0: i32, %arg1: memref<16x1xi32, #tpu.memory_space<vmem>>, %arg2: memref<1x16xf32, #tpu.memory_space<vmem>>, %arg3: memref<2x16xf32, #tpu.memory_space<vmem>>, %arg4: memref<416x32xf32, #tpu.memory_space<vmem>>, %arg5: memref<400x16xf32, #tpu.memory_space<vmem>>, %arg6: memref<80x64xf32, #tpu.memory_space<vmem>>, %arg7: memref<2x1xf32, #tpu.memory_space<vmem>>) attributes {dimension_semantics = [#tpu.dimension_semantics<arbitrary>], iteration_bounds = array<i64: 1>, scalar_prefetch = 0 : i64, scratch_operands = 0 : i64, tpu.core_type = #tpu.core_type<tc>, window_params = [{pipeline_mode = #tpu.pipeline_mode<synchronous>, transform_indices = @transform_0, window_bounds = array<i64: 16, 1>}, {pipeline_mode = #tpu.pipeline_mode<synchronous>, transform_indices = @transform_1, window_bounds = array<i64: 1, 16>}, {pipeline_mode = #tpu.pipeline_mode<synchronous>, transform_indices = @transform_2, window_bounds = array<i64: 2, 16>}, {pipeline_mode = #tpu.pipeline_mode<synchronous>, transform_indices = @transform_3, window_bounds = array<i64: 416, 32>}, {pipeline_mode = #tpu.pipeline_mode<synchronous>, transform_indices = @transform_4, window_bounds = array<i64: 400, 16>}, {pipeline_mode = #tpu.pipeline_mode<synchronous>, transform_indices = @transform_5, window_bounds = array<i64: 80, 64>}, {pipeline_mode = #tpu.pipeline_mode<synchronous>, transform_indices = @transform_6, window_bounds = array<i64: 2, 1>}]} {
    %c0 = arith.constant 0 : index
    %c0_0 = arith.constant 0 : index
    %0 = vector.load %arg1[%c0, %c0_0] : memref<16x1xi32, #tpu.memory_space<vmem>>, vector<16x1xi32>
    %1 = tpu.iota {dimensions = array<i32: 1>} : vector<16x128xi32>
    %2 = vector.broadcast %0 : vector<16x1xi32> to vector<16x128xi32>
    %3 = arith.cmpi eq, %2, %1 : vector<16x128xi32>
    %4 = arith.extui %3 : vector<16x128xi1> to vector<16x128xi32>
    %5 = arith.sitofp %4 : vector<16x128xi32> to vector<16x128xf32>
    %c0_1 = arith.constant 0 : index
    %c0_2 = arith.constant 0 : index
    %6 = vector.load %arg4[%c0_1, %c0_2] : memref<416x32xf32, #tpu.memory_space<vmem>>, vector<128x32xf32>
    %cst = arith.constant dense<0.000000e+00> : vector<16x32xf32>
    %7 = tpu.matmul %5, %6, %cst {dimension_numbers = #tpu.dot_dimension_numbers<[1], [0], [0], [1], [0, 0, 1, 1], [], []>} : vector<16x128xf32>, vector<128x32xf32>, vector<16x32xf32> -> vector<16x32xf32>
    %c128 = arith.constant 128 : index
    %c0_3 = arith.constant 0 : index
    %8 = vector.load %arg4[%c128, %c0_3] : memref<416x32xf32, #tpu.memory_space<vmem>>, vector<16x32xf32>
    %9 = arith.addf %7, %8 : vector<16x32xf32>
    %c144 = arith.constant 144 : index
    %c0_4 = arith.constant 0 : index
    %10 = vector.load %arg4[%c144, %c0_4] : memref<416x32xf32, #tpu.memory_space<vmem>>, vector<1x32xf32>
    %c145 = arith.constant 145 : index
    %c0_5 = arith.constant 0 : index
    %11 = vector.load %arg4[%c145, %c0_5] : memref<416x32xf32, #tpu.memory_space<vmem>>, vector<1x32xf32>
    %cst_6 = arith.constant dense<0.000000e+00> : vector<16xf32>
    %12 = vector.multi_reduction <add>, %9, %cst_6 [1] : vector<16x32xf32> to vector<16xf32>
    %13 = vector.shape_cast %12 : vector<16xf32> to vector<16x1xf32>
    %cst_7 = arith.constant 3.200000e+01 : f32
    %14 = vector.broadcast %cst_7 : f32 to vector<16x1xf32>
    %15 = arith.divf %13, %14 : vector<16x1xf32>
    %16 = vector.broadcast %15 : vector<16x1xf32> to vector<16x32xf32>
    %17 = arith.subf %9, %16 : vector<16x32xf32>
    %18 = arith.mulf %17, %17 : vector<16x32xf32>
    %cst_8 = arith.constant dense<0.000000e+00> : vector<16xf32>
    %19 = vector.multi_reduction <add>, %18, %cst_8 [1] : vector<16x32xf32> to vector<16xf32>
    %20 = vector.shape_cast %19 : vector<16xf32> to vector<16x1xf32>
    %cst_9 = arith.constant 3.200000e+01 : f32
    %21 = vector.broadcast %cst_9 : f32 to vector<16x1xf32>
    %22 = arith.divf %20, %21 : vector<16x1xf32>
    %23 = vector.broadcast %15 : vector<16x1xf32> to vector<16x32xf32>
    %24 = arith.subf %9, %23 : vector<16x32xf32>
    %cst_10 = arith.constant 9.99999996E-13 : f32
    %25 = vector.broadcast %cst_10 : f32 to vector<16x1xf32>
    %26 = arith.addf %22, %25 : vector<16x1xf32>
    %27 = math.rsqrt %26 : vector<16x1xf32>
    %28 = vector.broadcast %27 : vector<16x1xf32> to vector<16x32xf32>
    %29 = arith.mulf %24, %28 : vector<16x32xf32>
    %30 = vector.broadcast %10 : vector<1x32xf32> to vector<16x32xf32>
    %31 = arith.mulf %29, %30 : vector<16x32xf32>
    %32 = vector.broadcast %11 : vector<1x32xf32> to vector<16x32xf32>
    %33 = arith.addf %31, %32 : vector<16x32xf32>
    %34 = tpu.iota {dimensions = array<i32: 0>} : vector<16x16xi32>
    %35 = tpu.iota {dimensions = array<i32: 1>} : vector<16x16xi32>
    %c0_i32 = arith.constant 0 : i32
    %36 = vector.broadcast %c0_i32 : i32 to vector<16x16xi32>
    %37 = arith.cmpi sge, %34, %36 : vector<16x16xi32>
    %c8_i32 = arith.constant 8 : i32
    %38 = vector.broadcast %c8_i32 : i32 to vector<16x16xi32>
    %39 = arith.cmpi slt, %34, %38 : vector<16x16xi32>
    %40 = arith.andi %37, %39 : vector<16x16xi1>
    %c0_i32_11 = arith.constant 0 : i32
    %41 = vector.broadcast %c0_i32_11 : i32 to vector<16x16xi32>
    %42 = arith.cmpi sge, %35, %41 : vector<16x16xi32>
    %c8_i32_12 = arith.constant 8 : i32
    %43 = vector.broadcast %c8_i32_12 : i32 to vector<16x16xi32>
    %44 = arith.cmpi slt, %35, %43 : vector<16x16xi32>
    %45 = arith.andi %42, %44 : vector<16x16xi1>
    %46 = arith.andi %40, %45 : vector<16x16xi1>
    %c8_i32_13 = arith.constant 8 : i32
    %47 = vector.broadcast %c8_i32_13 : i32 to vector<16x16xi32>
    %48 = arith.cmpi sge, %34, %47 : vector<16x16xi32>
    %c16_i32 = arith.constant 16 : i32
    %49 = vector.broadcast %c16_i32 : i32 to vector<16x16xi32>
    %50 = arith.cmpi slt, %34, %49 : vector<16x16xi32>
    %51 = arith.andi %48, %50 : vector<16x16xi1>
    %c8_i32_14 = arith.constant 8 : i32
    %52 = vector.broadcast %c8_i32_14 : i32 to vector<16x16xi32>
    %53 = arith.cmpi sge, %35, %52 : vector<16x16xi32>
    %c16_i32_15 = arith.constant 16 : i32
    %54 = vector.broadcast %c16_i32_15 : i32 to vector<16x16xi32>
    %55 = arith.cmpi slt, %35, %54 : vector<16x16xi32>
    %56 = arith.andi %53, %55 : vector<16x16xi1>
    %57 = arith.andi %51, %56 : vector<16x16xi1>
    %58 = arith.ori %46, %57 : vector<16x16xi1>
    %c0_16 = arith.constant 0 : index
    %c0_17 = arith.constant 0 : index
    %59 = vector.load %arg2[%c0_16, %c0_17] : memref<1x16xf32, #tpu.memory_space<vmem>>, vector<1x16xf32>
    %cst_18 = arith.constant 1.000000e+00 : f32
    %60 = vector.broadcast %cst_18 : f32 to vector<1x16xf32>
    %61 = arith.subf %60, %59 : vector<1x16xf32>
    %cst_19 = arith.constant -1.000000e+09 : f32
    %62 = vector.broadcast %cst_19 : f32 to vector<1x16xf32>
    %63 = arith.mulf %61, %62 : vector<1x16xf32>
    %cst_20 = arith.constant -1.000000e+09 : f32
    %64 = vector.shape_cast %63 : vector<1x16xf32> to vector<1x16xf32>
    %65 = vector.broadcast %64 : vector<1x16xf32> to vector<16x16xf32>
    %66 = vector.broadcast %cst_20 : f32 to vector<16x16xf32>
    %67 = arith.select %58, %65, %66 : vector<16x16xi1>, vector<16x16xf32>
    %cst_21 = arith.constant 0.000000e+00 : f32
    %68 = vector.broadcast %cst_21 : f32 to vector<16x32xf32>
    %c0_22 = arith.constant 0 : index
    %c0_23 = arith.constant 0 : index
    %69 = vector.load %arg5[%c0_22, %c0_23] : memref<400x16xf32, #tpu.memory_space<vmem>>, vector<32x16xf32>
    %cst_24 = arith.constant dense<0.000000e+00> : vector<16x16xf32>
    %70 = tpu.matmul %33, %69, %cst_24 {dimension_numbers = #tpu.dot_dimension_numbers<[1], [0], [0], [1], [0, 0, 1, 1], [], []>} : vector<16x32xf32>, vector<32x16xf32>, vector<16x16xf32> -> vector<16x16xf32>
    %c384 = arith.constant 384 : index
    %c0_25 = arith.constant 0 : index
    %71 = vector.load %arg5[%c384, %c0_25] : memref<400x16xf32, #tpu.memory_space<vmem>>, vector<1x16xf32>
    %72 = vector.broadcast %71 : vector<1x16xf32> to vector<16x16xf32>
    %73 = arith.addf %70, %72 : vector<16x16xf32>
    %c64 = arith.constant 64 : index
    %c0_26 = arith.constant 0 : index
    %74 = vector.load %arg5[%c64, %c0_26] : memref<400x16xf32, #tpu.memory_space<vmem>>, vector<32x16xf32>
    %cst_27 = arith.constant dense<0.000000e+00> : vector<16x16xf32>
    %75 = tpu.matmul %33, %74, %cst_27 {dimension_numbers = #tpu.dot_dimension_numbers<[1], [0], [0], [1], [0, 0, 1, 1], [], []>} : vector<16x32xf32>, vector<32x16xf32>, vector<16x16xf32> -> vector<16x16xf32>
    %c386 = arith.constant 386 : index
    %c0_28 = arith.constant 0 : index
    %76 = vector.load %arg5[%c386, %c0_28] : memref<400x16xf32, #tpu.memory_space<vmem>>, vector<1x16xf32>
    %77 = vector.broadcast %76 : vector<1x16xf32> to vector<16x16xf32>
    %78 = arith.addf %75, %77 : vector<16x16xf32>
    %c128_29 = arith.constant 128 : index
    %c0_30 = arith.constant 0 : index
    %79 = vector.load %arg5[%c128_29, %c0_30] : memref<400x16xf32, #tpu.memory_space<vmem>>, vector<32x16xf32>
    %cst_31 = arith.constant dense<0.000000e+00> : vector<16x16xf32>
    %80 = tpu.matmul %33, %79, %cst_31 {dimension_numbers = #tpu.dot_dimension_numbers<[1], [0], [0], [1], [0, 0, 1, 1], [], []>} : vector<16x32xf32>, vector<32x16xf32>, vector<16x16xf32> -> vector<16x16xf32>
    %c388 = arith.constant 388 : index
    %c0_32 = arith.constant 0 : index
    %81 = vector.load %arg5[%c388, %c0_32] : memref<400x16xf32, #tpu.memory_space<vmem>>, vector<1x16xf32>
    %82 = vector.broadcast %81 : vector<1x16xf32> to vector<16x16xf32>
    %83 = arith.addf %80, %82 : vector<16x16xf32>
    %cst_33 = arith.constant dense<0.000000e+00> : vector<16x16xf32>
    %84 = tpu.matmul %73, %78, %cst_33 {dimension_numbers = #tpu.dot_dimension_numbers<[1], [1], [0], [0], [0, 0, 1, 0], [], []>} : vector<16x16xf32>, vector<16x16xf32>, vector<16x16xf32> -> vector<16x16xf32>
    %cst_34 = arith.constant 2.500000e-01 : f32
    %85 = vector.broadcast %cst_34 : f32 to vector<16x16xf32>
    %86 = arith.mulf %84, %85 : vector<16x16xf32>
    %87 = arith.addf %86, %67 : vector<16x16xf32>
    %cst_35 = arith.constant dense<0xFF800000> : vector<16xf32>
    %88 = vector.multi_reduction <maximumf>, %87, %cst_35 [1] : vector<16x16xf32> to vector<16xf32>
    %89 = vector.shape_cast %88 : vector<16xf32> to vector<16x1xf32>
    %90 = vector.broadcast %89 : vector<16x1xf32> to vector<16x16xf32>
    %91 = arith.subf %87, %90 : vector<16x16xf32>
    %92 = math.exp %91 : vector<16x16xf32>
    %cst_36 = arith.constant dense<0.000000e+00> : vector<16xf32>
    %93 = vector.multi_reduction <add>, %92, %cst_36 [1] : vector<16x16xf32> to vector<16xf32>
    %94 = vector.shape_cast %93 : vector<16xf32> to vector<16x1xf32>
    %95 = tpu.reciprocal %94 {approx = true} : vector<16x1xf32> -> vector<16x1xf32>
    %96 = vector.broadcast %95 : vector<16x1xf32> to vector<16x16xf32>
    %97 = arith.mulf %92, %96 : vector<16x16xf32>
    %cst_37 = arith.constant dense<0.000000e+00> : vector<16x16xf32>
    %98 = tpu.matmul %97, %83, %cst_37 {dimension_numbers = #tpu.dot_dimension_numbers<[1], [0], [0], [1], [0, 0, 1, 1], [], []>} : vector<16x16xf32>, vector<16x16xf32>, vector<16x16xf32> -> vector<16x16xf32>
    %c152 = arith.constant 152 : index
    %c0_38 = arith.constant 0 : index
    %99 = vector.load %arg4[%c152, %c0_38] : memref<416x32xf32, #tpu.memory_space<vmem>>, vector<16x32xf32>
    %cst_39 = arith.constant dense<0.000000e+00> : vector<16x32xf32>
    %100 = tpu.matmul %98, %99, %cst_39 {dimension_numbers = #tpu.dot_dimension_numbers<[1], [0], [0], [1], [0, 0, 1, 1], [], []>} : vector<16x16xf32>, vector<16x32xf32>, vector<16x32xf32> -> vector<16x32xf32>
    %101 = arith.addf %68, %100 : vector<16x32xf32>
    %c32 = arith.constant 32 : index
    %c0_40 = arith.constant 0 : index
    %102 = vector.load %arg5[%c32, %c0_40] : memref<400x16xf32, #tpu.memory_space<vmem>>, vector<32x16xf32>
    %cst_41 = arith.constant dense<0.000000e+00> : vector<16x16xf32>
    %103 = tpu.matmul %33, %102, %cst_41 {dimension_numbers = #tpu.dot_dimension_numbers<[1], [0], [0], [1], [0, 0, 1, 1], [], []>} : vector<16x32xf32>, vector<32x16xf32>, vector<16x16xf32> -> vector<16x16xf32>
    %c385 = arith.constant 385 : index
    %c0_42 = arith.constant 0 : index
    %104 = vector.load %arg5[%c385, %c0_42] : memref<400x16xf32, #tpu.memory_space<vmem>>, vector<1x16xf32>
    %105 = vector.broadcast %104 : vector<1x16xf32> to vector<16x16xf32>
    %106 = arith.addf %103, %105 : vector<16x16xf32>
    %c96 = arith.constant 96 : index
    %c0_43 = arith.constant 0 : index
    %107 = vector.load %arg5[%c96, %c0_43] : memref<400x16xf32, #tpu.memory_space<vmem>>, vector<32x16xf32>
    %cst_44 = arith.constant dense<0.000000e+00> : vector<16x16xf32>
    %108 = tpu.matmul %33, %107, %cst_44 {dimension_numbers = #tpu.dot_dimension_numbers<[1], [0], [0], [1], [0, 0, 1, 1], [], []>} : vector<16x32xf32>, vector<32x16xf32>, vector<16x16xf32> -> vector<16x16xf32>
    %c387 = arith.constant 387 : index
    %c0_45 = arith.constant 0 : index
    %109 = vector.load %arg5[%c387, %c0_45] : memref<400x16xf32, #tpu.memory_space<vmem>>, vector<1x16xf32>
    %110 = vector.broadcast %109 : vector<1x16xf32> to vector<16x16xf32>
    %111 = arith.addf %108, %110 : vector<16x16xf32>
    %c160 = arith.constant 160 : index
    %c0_46 = arith.constant 0 : index
    %112 = vector.load %arg5[%c160, %c0_46] : memref<400x16xf32, #tpu.memory_space<vmem>>, vector<32x16xf32>
    %cst_47 = arith.constant dense<0.000000e+00> : vector<16x16xf32>
    %113 = tpu.matmul %33, %112, %cst_47 {dimension_numbers = #tpu.dot_dimension_numbers<[1], [0], [0], [1], [0, 0, 1, 1], [], []>} : vector<16x32xf32>, vector<32x16xf32>, vector<16x16xf32> -> vector<16x16xf32>
    %c389 = arith.constant 389 : index
    %c0_48 = arith.constant 0 : index
    %114 = vector.load %arg5[%c389, %c0_48] : memref<400x16xf32, #tpu.memory_space<vmem>>, vector<1x16xf32>
    %115 = vector.broadcast %114 : vector<1x16xf32> to vector<16x16xf32>
    %116 = arith.addf %113, %115 : vector<16x16xf32>
    %cst_49 = arith.constant dense<0.000000e+00> : vector<16x16xf32>
    %117 = tpu.matmul %106, %111, %cst_49 {dimension_numbers = #tpu.dot_dimension_numbers<[1], [1], [0], [0], [0, 0, 1, 0], [], []>} : vector<16x16xf32>, vector<16x16xf32>, vector<16x16xf32> -> vector<16x16xf32>
    %cst_50 = arith.constant 2.500000e-01 : f32
    %118 = vector.broadcast %cst_50 : f32 to vector<16x16xf32>
    %119 = arith.mulf %117, %118 : vector<16x16xf32>
    %120 = arith.addf %119, %67 : vector<16x16xf32>
    %cst_51 = arith.constant dense<0xFF800000> : vector<16xf32>
    %121 = vector.multi_reduction <maximumf>, %120, %cst_51 [1] : vector<16x16xf32> to vector<16xf32>
    %122 = vector.shape_cast %121 : vector<16xf32> to vector<16x1xf32>
    %123 = vector.broadcast %122 : vector<16x1xf32> to vector<16x16xf32>
    %124 = arith.subf %120, %123 : vector<16x16xf32>
    %125 = math.exp %124 : vector<16x16xf32>
    %cst_52 = arith.constant dense<0.000000e+00> : vector<16xf32>
    %126 = vector.multi_reduction <add>, %125, %cst_52 [1] : vector<16x16xf32> to vector<16xf32>
    %127 = vector.shape_cast %126 : vector<16xf32> to vector<16x1xf32>
    %128 = tpu.reciprocal %127 {approx = true} : vector<16x1xf32> -> vector<16x1xf32>
    %129 = vector.broadcast %128 : vector<16x1xf32> to vector<16x16xf32>
    %130 = arith.mulf %125, %129 : vector<16x16xf32>
    %cst_53 = arith.constant dense<0.000000e+00> : vector<16x16xf32>
    %131 = tpu.matmul %130, %116, %cst_53 {dimension_numbers = #tpu.dot_dimension_numbers<[1], [0], [0], [1], [0, 0, 1, 1], [], []>} : vector<16x16xf32>, vector<16x16xf32>, vector<16x16xf32> -> vector<16x16xf32>
    %c168 = arith.constant 168 : index
    %c0_54 = arith.constant 0 : index
    %132 = vector.load %arg4[%c168, %c0_54] : memref<416x32xf32, #tpu.memory_space<vmem>>, vector<16x32xf32>
    %cst_55 = arith.constant dense<0.000000e+00> : vector<16x32xf32>
    %133 = tpu.matmul %131, %132, %cst_55 {dimension_numbers = #tpu.dot_dimension_numbers<[1], [0], [0], [1], [0, 0, 1, 1], [], []>} : vector<16x16xf32>, vector<16x32xf32>, vector<16x32xf32> -> vector<16x32xf32>
    %134 = arith.addf %101, %133 : vector<16x32xf32>
    %c248 = arith.constant 248 : index
    %c0_56 = arith.constant 0 : index
    %135 = vector.load %arg4[%c248, %c0_56] : memref<416x32xf32, #tpu.memory_space<vmem>>, vector<1x32xf32>
    %136 = vector.broadcast %135 : vector<1x32xf32> to vector<16x32xf32>
    %137 = arith.addf %134, %136 : vector<16x32xf32>
    %138 = arith.addf %33, %137 : vector<16x32xf32>
    %c249 = arith.constant 249 : index
    %c0_57 = arith.constant 0 : index
    %139 = vector.load %arg4[%c249, %c0_57] : memref<416x32xf32, #tpu.memory_space<vmem>>, vector<1x32xf32>
    %c250 = arith.constant 250 : index
    %c0_58 = arith.constant 0 : index
    %140 = vector.load %arg4[%c250, %c0_58] : memref<416x32xf32, #tpu.memory_space<vmem>>, vector<1x32xf32>
    %cst_59 = arith.constant dense<0.000000e+00> : vector<16xf32>
    %141 = vector.multi_reduction <add>, %138, %cst_59 [1] : vector<16x32xf32> to vector<16xf32>
    %142 = vector.shape_cast %141 : vector<16xf32> to vector<16x1xf32>
    %cst_60 = arith.constant 3.200000e+01 : f32
    %143 = vector.broadcast %cst_60 : f32 to vector<16x1xf32>
    %144 = arith.divf %142, %143 : vector<16x1xf32>
    %145 = vector.broadcast %144 : vector<16x1xf32> to vector<16x32xf32>
    %146 = arith.subf %138, %145 : vector<16x32xf32>
    %147 = arith.mulf %146, %146 : vector<16x32xf32>
    %cst_61 = arith.constant dense<0.000000e+00> : vector<16xf32>
    %148 = vector.multi_reduction <add>, %147, %cst_61 [1] : vector<16x32xf32> to vector<16xf32>
    %149 = vector.shape_cast %148 : vector<16xf32> to vector<16x1xf32>
    %cst_62 = arith.constant 3.200000e+01 : f32
    %150 = vector.broadcast %cst_62 : f32 to vector<16x1xf32>
    %151 = arith.divf %149, %150 : vector<16x1xf32>
    %152 = vector.broadcast %144 : vector<16x1xf32> to vector<16x32xf32>
    %153 = arith.subf %138, %152 : vector<16x32xf32>
    %cst_63 = arith.constant 9.99999996E-13 : f32
    %154 = vector.broadcast %cst_63 : f32 to vector<16x1xf32>
    %155 = arith.addf %151, %154 : vector<16x1xf32>
    %156 = math.rsqrt %155 : vector<16x1xf32>
    %157 = vector.broadcast %156 : vector<16x1xf32> to vector<16x32xf32>
    %158 = arith.mulf %153, %157 : vector<16x32xf32>
    %159 = vector.broadcast %139 : vector<1x32xf32> to vector<16x32xf32>
    %160 = arith.mulf %158, %159 : vector<16x32xf32>
    %161 = vector.broadcast %140 : vector<1x32xf32> to vector<16x32xf32>
    %162 = arith.addf %160, %161 : vector<16x32xf32>
    %c0_64 = arith.constant 0 : index
    %c0_65 = arith.constant 0 : index
    %163 = vector.load %arg6[%c0_64, %c0_65] : memref<80x64xf32, #tpu.memory_space<vmem>>, vector<32x64xf32>
    %cst_66 = arith.constant dense<0.000000e+00> : vector<16x64xf32>
    %164 = tpu.matmul %162, %163, %cst_66 {dimension_numbers = #tpu.dot_dimension_numbers<[1], [0], [0], [1], [0, 0, 1, 1], [], []>} : vector<16x32xf32>, vector<32x64xf32>, vector<16x64xf32> -> vector<16x64xf32>
    %c32_67 = arith.constant 32 : index
    %c0_68 = arith.constant 0 : index
    %165 = vector.load %arg6[%c32_67, %c0_68] : memref<80x64xf32, #tpu.memory_space<vmem>>, vector<1x64xf32>
    %166 = vector.broadcast %165 : vector<1x64xf32> to vector<16x64xf32>
    %167 = arith.addf %164, %166 : vector<16x64xf32>
    %168 = arith.mulf %167, %167 : vector<16x64xf32>
    %169 = arith.mulf %167, %168 : vector<16x64xf32>
    %cst_69 = arith.constant 4.471500e-02 : f32
    %170 = vector.broadcast %cst_69 : f32 to vector<16x64xf32>
    %171 = arith.mulf %170, %169 : vector<16x64xf32>
    %172 = arith.addf %167, %171 : vector<16x64xf32>
    %cst_70 = arith.constant 0.797884583 : f32
    %173 = vector.broadcast %cst_70 : f32 to vector<16x64xf32>
    %174 = arith.mulf %173, %172 : vector<16x64xf32>
    %175 = math.tanh %174 : vector<16x64xf32>
    %cst_71 = arith.constant 1.000000e+00 : f32
    %176 = vector.broadcast %cst_71 : f32 to vector<16x64xf32>
    %177 = arith.addf %176, %175 : vector<16x64xf32>
    %cst_72 = arith.constant 5.000000e-01 : f32
    %178 = vector.broadcast %cst_72 : f32 to vector<16x64xf32>
    %179 = arith.mulf %178, %177 : vector<16x64xf32>
    %180 = arith.mulf %167, %179 : vector<16x64xf32>
    %c184 = arith.constant 184 : index
    %c0_73 = arith.constant 0 : index
    %181 = vector.load %arg4[%c184, %c0_73] : memref<416x32xf32, #tpu.memory_space<vmem>>, vector<64x32xf32>
    %cst_74 = arith.constant dense<0.000000e+00> : vector<16x32xf32>
    %182 = tpu.matmul %180, %181, %cst_74 {dimension_numbers = #tpu.dot_dimension_numbers<[1], [0], [0], [1], [0, 0, 1, 1], [], []>} : vector<16x64xf32>, vector<64x32xf32>, vector<16x32xf32> -> vector<16x32xf32>
    %c251 = arith.constant 251 : index
    %c0_75 = arith.constant 0 : index
    %183 = vector.load %arg4[%c251, %c0_75] : memref<416x32xf32, #tpu.memory_space<vmem>>, vector<1x32xf32>
    %184 = vector.broadcast %183 : vector<1x32xf32> to vector<16x32xf32>
    %185 = arith.addf %182, %184 : vector<16x32xf32>
    %186 = arith.addf %162, %185 : vector<16x32xf32>
    %c252 = arith.constant 252 : index
    %c0_76 = arith.constant 0 : index
    %187 = vector.load %arg4[%c252, %c0_76] : memref<416x32xf32, #tpu.memory_space<vmem>>, vector<1x32xf32>
    %c253 = arith.constant 253 : index
    %c0_77 = arith.constant 0 : index
    %188 = vector.load %arg4[%c253, %c0_77] : memref<416x32xf32, #tpu.memory_space<vmem>>, vector<1x32xf32>
    %cst_78 = arith.constant dense<0.000000e+00> : vector<16xf32>
    %189 = vector.multi_reduction <add>, %186, %cst_78 [1] : vector<16x32xf32> to vector<16xf32>
    %190 = vector.shape_cast %189 : vector<16xf32> to vector<16x1xf32>
    %cst_79 = arith.constant 3.200000e+01 : f32
    %191 = vector.broadcast %cst_79 : f32 to vector<16x1xf32>
    %192 = arith.divf %190, %191 : vector<16x1xf32>
    %193 = vector.broadcast %192 : vector<16x1xf32> to vector<16x32xf32>
    %194 = arith.subf %186, %193 : vector<16x32xf32>
    %195 = arith.mulf %194, %194 : vector<16x32xf32>
    %cst_80 = arith.constant dense<0.000000e+00> : vector<16xf32>
    %196 = vector.multi_reduction <add>, %195, %cst_80 [1] : vector<16x32xf32> to vector<16xf32>
    %197 = vector.shape_cast %196 : vector<16xf32> to vector<16x1xf32>
    %cst_81 = arith.constant 3.200000e+01 : f32
    %198 = vector.broadcast %cst_81 : f32 to vector<16x1xf32>
    %199 = arith.divf %197, %198 : vector<16x1xf32>
    %200 = vector.broadcast %192 : vector<16x1xf32> to vector<16x32xf32>
    %201 = arith.subf %186, %200 : vector<16x32xf32>
    %cst_82 = arith.constant 9.99999996E-13 : f32
    %202 = vector.broadcast %cst_82 : f32 to vector<16x1xf32>
    %203 = arith.addf %199, %202 : vector<16x1xf32>
    %204 = math.rsqrt %203 : vector<16x1xf32>
    %205 = vector.broadcast %204 : vector<16x1xf32> to vector<16x32xf32>
    %206 = arith.mulf %201, %205 : vector<16x32xf32>
    %207 = vector.broadcast %187 : vector<1x32xf32> to vector<16x32xf32>
    %208 = arith.mulf %206, %207 : vector<16x32xf32>
    %209 = vector.broadcast %188 : vector<1x32xf32> to vector<16x32xf32>
    %210 = arith.addf %208, %209 : vector<16x32xf32>
    %cst_83 = arith.constant 0.000000e+00 : f32
    %211 = vector.broadcast %cst_83 : f32 to vector<16x32xf32>
    %c192 = arith.constant 192 : index
    %c0_84 = arith.constant 0 : index
    %212 = vector.load %arg5[%c192, %c0_84] : memref<400x16xf32, #tpu.memory_space<vmem>>, vector<32x16xf32>
    %cst_85 = arith.constant dense<0.000000e+00> : vector<16x16xf32>
    %213 = tpu.matmul %210, %212, %cst_85 {dimension_numbers = #tpu.dot_dimension_numbers<[1], [0], [0], [1], [0, 0, 1, 1], [], []>} : vector<16x32xf32>, vector<32x16xf32>, vector<16x16xf32> -> vector<16x16xf32>
    %c390 = arith.constant 390 : index
    %c0_86 = arith.constant 0 : index
    %214 = vector.load %arg5[%c390, %c0_86] : memref<400x16xf32, #tpu.memory_space<vmem>>, vector<1x16xf32>
    %215 = vector.broadcast %214 : vector<1x16xf32> to vector<16x16xf32>
    %216 = arith.addf %213, %215 : vector<16x16xf32>
    %c256 = arith.constant 256 : index
    %c0_87 = arith.constant 0 : index
    %217 = vector.load %arg5[%c256, %c0_87] : memref<400x16xf32, #tpu.memory_space<vmem>>, vector<32x16xf32>
    %cst_88 = arith.constant dense<0.000000e+00> : vector<16x16xf32>
    %218 = tpu.matmul %210, %217, %cst_88 {dimension_numbers = #tpu.dot_dimension_numbers<[1], [0], [0], [1], [0, 0, 1, 1], [], []>} : vector<16x32xf32>, vector<32x16xf32>, vector<16x16xf32> -> vector<16x16xf32>
    %c392 = arith.constant 392 : index
    %c0_89 = arith.constant 0 : index
    %219 = vector.load %arg5[%c392, %c0_89] : memref<400x16xf32, #tpu.memory_space<vmem>>, vector<1x16xf32>
    %220 = vector.broadcast %219 : vector<1x16xf32> to vector<16x16xf32>
    %221 = arith.addf %218, %220 : vector<16x16xf32>
    %c320 = arith.constant 320 : index
    %c0_90 = arith.constant 0 : index
    %222 = vector.load %arg5[%c320, %c0_90] : memref<400x16xf32, #tpu.memory_space<vmem>>, vector<32x16xf32>
    %cst_91 = arith.constant dense<0.000000e+00> : vector<16x16xf32>
    %223 = tpu.matmul %210, %222, %cst_91 {dimension_numbers = #tpu.dot_dimension_numbers<[1], [0], [0], [1], [0, 0, 1, 1], [], []>} : vector<16x32xf32>, vector<32x16xf32>, vector<16x16xf32> -> vector<16x16xf32>
    %c394 = arith.constant 394 : index
    %c0_92 = arith.constant 0 : index
    %224 = vector.load %arg5[%c394, %c0_92] : memref<400x16xf32, #tpu.memory_space<vmem>>, vector<1x16xf32>
    %225 = vector.broadcast %224 : vector<1x16xf32> to vector<16x16xf32>
    %226 = arith.addf %223, %225 : vector<16x16xf32>
    %cst_93 = arith.constant dense<0.000000e+00> : vector<16x16xf32>
    %227 = tpu.matmul %216, %221, %cst_93 {dimension_numbers = #tpu.dot_dimension_numbers<[1], [1], [0], [0], [0, 0, 1, 0], [], []>} : vector<16x16xf32>, vector<16x16xf32>, vector<16x16xf32> -> vector<16x16xf32>
    %cst_94 = arith.constant 2.500000e-01 : f32
    %228 = vector.broadcast %cst_94 : f32 to vector<16x16xf32>
    %229 = arith.mulf %227, %228 : vector<16x16xf32>
    %230 = arith.addf %229, %67 : vector<16x16xf32>
    %cst_95 = arith.constant dense<0xFF800000> : vector<16xf32>
    %231 = vector.multi_reduction <maximumf>, %230, %cst_95 [1] : vector<16x16xf32> to vector<16xf32>
    %232 = vector.shape_cast %231 : vector<16xf32> to vector<16x1xf32>
    %233 = vector.broadcast %232 : vector<16x1xf32> to vector<16x16xf32>
    %234 = arith.subf %230, %233 : vector<16x16xf32>
    %235 = math.exp %234 : vector<16x16xf32>
    %cst_96 = arith.constant dense<0.000000e+00> : vector<16xf32>
    %236 = vector.multi_reduction <add>, %235, %cst_96 [1] : vector<16x16xf32> to vector<16xf32>
    %237 = vector.shape_cast %236 : vector<16xf32> to vector<16x1xf32>
    %238 = tpu.reciprocal %237 {approx = true} : vector<16x1xf32> -> vector<16x1xf32>
    %239 = vector.broadcast %238 : vector<16x1xf32> to vector<16x16xf32>
    %240 = arith.mulf %235, %239 : vector<16x16xf32>
    %cst_97 = arith.constant dense<0.000000e+00> : vector<16x16xf32>
    %241 = tpu.matmul %240, %226, %cst_97 {dimension_numbers = #tpu.dot_dimension_numbers<[1], [0], [0], [1], [0, 0, 1, 1], [], []>} : vector<16x16xf32>, vector<16x16xf32>, vector<16x16xf32> -> vector<16x16xf32>
    %c256_98 = arith.constant 256 : index
    %c0_99 = arith.constant 0 : index
    %242 = vector.load %arg4[%c256_98, %c0_99] : memref<416x32xf32, #tpu.memory_space<vmem>>, vector<16x32xf32>
    %cst_100 = arith.constant dense<0.000000e+00> : vector<16x32xf32>
    %243 = tpu.matmul %241, %242, %cst_100 {dimension_numbers = #tpu.dot_dimension_numbers<[1], [0], [0], [1], [0, 0, 1, 1], [], []>} : vector<16x16xf32>, vector<16x32xf32>, vector<16x32xf32> -> vector<16x32xf32>
    %244 = arith.addf %211, %243 : vector<16x32xf32>
    %c224 = arith.constant 224 : index
    %c0_101 = arith.constant 0 : index
    %245 = vector.load %arg5[%c224, %c0_101] : memref<400x16xf32, #tpu.memory_space<vmem>>, vector<32x16xf32>
    %cst_102 = arith.constant dense<0.000000e+00> : vector<16x16xf32>
    %246 = tpu.matmul %210, %245, %cst_102 {dimension_numbers = #tpu.dot_dimension_numbers<[1], [0], [0], [1], [0, 0, 1, 1], [], []>} : vector<16x32xf32>, vector<32x16xf32>, vector<16x16xf32> -> vector<16x16xf32>
    %c391 = arith.constant 391 : index
    %c0_103 = arith.constant 0 : index
    %247 = vector.load %arg5[%c391, %c0_103] : memref<400x16xf32, #tpu.memory_space<vmem>>, vector<1x16xf32>
    %248 = vector.broadcast %247 : vector<1x16xf32> to vector<16x16xf32>
    %249 = arith.addf %246, %248 : vector<16x16xf32>
    %c288 = arith.constant 288 : index
    %c0_104 = arith.constant 0 : index
    %250 = vector.load %arg5[%c288, %c0_104] : memref<400x16xf32, #tpu.memory_space<vmem>>, vector<32x16xf32>
    %cst_105 = arith.constant dense<0.000000e+00> : vector<16x16xf32>
    %251 = tpu.matmul %210, %250, %cst_105 {dimension_numbers = #tpu.dot_dimension_numbers<[1], [0], [0], [1], [0, 0, 1, 1], [], []>} : vector<16x32xf32>, vector<32x16xf32>, vector<16x16xf32> -> vector<16x16xf32>
    %c393 = arith.constant 393 : index
    %c0_106 = arith.constant 0 : index
    %252 = vector.load %arg5[%c393, %c0_106] : memref<400x16xf32, #tpu.memory_space<vmem>>, vector<1x16xf32>
    %253 = vector.broadcast %252 : vector<1x16xf32> to vector<16x16xf32>
    %254 = arith.addf %251, %253 : vector<16x16xf32>
    %c352 = arith.constant 352 : index
    %c0_107 = arith.constant 0 : index
    %255 = vector.load %arg5[%c352, %c0_107] : memref<400x16xf32, #tpu.memory_space<vmem>>, vector<32x16xf32>
    %cst_108 = arith.constant dense<0.000000e+00> : vector<16x16xf32>
    %256 = tpu.matmul %210, %255, %cst_108 {dimension_numbers = #tpu.dot_dimension_numbers<[1], [0], [0], [1], [0, 0, 1, 1], [], []>} : vector<16x32xf32>, vector<32x16xf32>, vector<16x16xf32> -> vector<16x16xf32>
    %c395 = arith.constant 395 : index
    %c0_109 = arith.constant 0 : index
    %257 = vector.load %arg5[%c395, %c0_109] : memref<400x16xf32, #tpu.memory_space<vmem>>, vector<1x16xf32>
    %258 = vector.broadcast %257 : vector<1x16xf32> to vector<16x16xf32>
    %259 = arith.addf %256, %258 : vector<16x16xf32>
    %cst_110 = arith.constant dense<0.000000e+00> : vector<16x16xf32>
    %260 = tpu.matmul %249, %254, %cst_110 {dimension_numbers = #tpu.dot_dimension_numbers<[1], [1], [0], [0], [0, 0, 1, 0], [], []>} : vector<16x16xf32>, vector<16x16xf32>, vector<16x16xf32> -> vector<16x16xf32>
    %cst_111 = arith.constant 2.500000e-01 : f32
    %261 = vector.broadcast %cst_111 : f32 to vector<16x16xf32>
    %262 = arith.mulf %260, %261 : vector<16x16xf32>
    %263 = arith.addf %262, %67 : vector<16x16xf32>
    %cst_112 = arith.constant dense<0xFF800000> : vector<16xf32>
    %264 = vector.multi_reduction <maximumf>, %263, %cst_112 [1] : vector<16x16xf32> to vector<16xf32>
    %265 = vector.shape_cast %264 : vector<16xf32> to vector<16x1xf32>
    %266 = vector.broadcast %265 : vector<16x1xf32> to vector<16x16xf32>
    %267 = arith.subf %263, %266 : vector<16x16xf32>
    %268 = math.exp %267 : vector<16x16xf32>
    %cst_113 = arith.constant dense<0.000000e+00> : vector<16xf32>
    %269 = vector.multi_reduction <add>, %268, %cst_113 [1] : vector<16x16xf32> to vector<16xf32>
    %270 = vector.shape_cast %269 : vector<16xf32> to vector<16x1xf32>
    %271 = tpu.reciprocal %270 {approx = true} : vector<16x1xf32> -> vector<16x1xf32>
    %272 = vector.broadcast %271 : vector<16x1xf32> to vector<16x16xf32>
    %273 = arith.mulf %268, %272 : vector<16x16xf32>
    %cst_114 = arith.constant dense<0.000000e+00> : vector<16x16xf32>
    %274 = tpu.matmul %273, %259, %cst_114 {dimension_numbers = #tpu.dot_dimension_numbers<[1], [0], [0], [1], [0, 0, 1, 1], [], []>} : vector<16x16xf32>, vector<16x16xf32>, vector<16x16xf32> -> vector<16x16xf32>
    %c272 = arith.constant 272 : index
    %c0_115 = arith.constant 0 : index
    %275 = vector.load %arg4[%c272, %c0_115] : memref<416x32xf32, #tpu.memory_space<vmem>>, vector<16x32xf32>
    %cst_116 = arith.constant dense<0.000000e+00> : vector<16x32xf32>
    %276 = tpu.matmul %274, %275, %cst_116 {dimension_numbers = #tpu.dot_dimension_numbers<[1], [0], [0], [1], [0, 0, 1, 1], [], []>} : vector<16x16xf32>, vector<16x32xf32>, vector<16x32xf32> -> vector<16x32xf32>
    %277 = arith.addf %244, %276 : vector<16x32xf32>
    %c352_117 = arith.constant 352 : index
    %c0_118 = arith.constant 0 : index
    %278 = vector.load %arg4[%c352_117, %c0_118] : memref<416x32xf32, #tpu.memory_space<vmem>>, vector<1x32xf32>
    %279 = vector.broadcast %278 : vector<1x32xf32> to vector<16x32xf32>
    %280 = arith.addf %277, %279 : vector<16x32xf32>
    %281 = arith.addf %210, %280 : vector<16x32xf32>
    %c353 = arith.constant 353 : index
    %c0_119 = arith.constant 0 : index
    %282 = vector.load %arg4[%c353, %c0_119] : memref<416x32xf32, #tpu.memory_space<vmem>>, vector<1x32xf32>
    %c354 = arith.constant 354 : index
    %c0_120 = arith.constant 0 : index
    %283 = vector.load %arg4[%c354, %c0_120] : memref<416x32xf32, #tpu.memory_space<vmem>>, vector<1x32xf32>
    %cst_121 = arith.constant dense<0.000000e+00> : vector<16xf32>
    %284 = vector.multi_reduction <add>, %281, %cst_121 [1] : vector<16x32xf32> to vector<16xf32>
    %285 = vector.shape_cast %284 : vector<16xf32> to vector<16x1xf32>
    %cst_122 = arith.constant 3.200000e+01 : f32
    %286 = vector.broadcast %cst_122 : f32 to vector<16x1xf32>
    %287 = arith.divf %285, %286 : vector<16x1xf32>
    %288 = vector.broadcast %287 : vector<16x1xf32> to vector<16x32xf32>
    %289 = arith.subf %281, %288 : vector<16x32xf32>
    %290 = arith.mulf %289, %289 : vector<16x32xf32>
    %cst_123 = arith.constant dense<0.000000e+00> : vector<16xf32>
    %291 = vector.multi_reduction <add>, %290, %cst_123 [1] : vector<16x32xf32> to vector<16xf32>
    %292 = vector.shape_cast %291 : vector<16xf32> to vector<16x1xf32>
    %cst_124 = arith.constant 3.200000e+01 : f32
    %293 = vector.broadcast %cst_124 : f32 to vector<16x1xf32>
    %294 = arith.divf %292, %293 : vector<16x1xf32>
    %295 = vector.broadcast %287 : vector<16x1xf32> to vector<16x32xf32>
    %296 = arith.subf %281, %295 : vector<16x32xf32>
    %cst_125 = arith.constant 9.99999996E-13 : f32
    %297 = vector.broadcast %cst_125 : f32 to vector<16x1xf32>
    %298 = arith.addf %294, %297 : vector<16x1xf32>
    %299 = math.rsqrt %298 : vector<16x1xf32>
    %300 = vector.broadcast %299 : vector<16x1xf32> to vector<16x32xf32>
    %301 = arith.mulf %296, %300 : vector<16x32xf32>
    %302 = vector.broadcast %282 : vector<1x32xf32> to vector<16x32xf32>
    %303 = arith.mulf %301, %302 : vector<16x32xf32>
    %304 = vector.broadcast %283 : vector<1x32xf32> to vector<16x32xf32>
    %305 = arith.addf %303, %304 : vector<16x32xf32>
    %c40 = arith.constant 40 : index
    %c0_126 = arith.constant 0 : index
    %306 = vector.load %arg6[%c40, %c0_126] : memref<80x64xf32, #tpu.memory_space<vmem>>, vector<32x64xf32>
    %cst_127 = arith.constant dense<0.000000e+00> : vector<16x64xf32>
    %307 = tpu.matmul %305, %306, %cst_127 {dimension_numbers = #tpu.dot_dimension_numbers<[1], [0], [0], [1], [0, 0, 1, 1], [], []>} : vector<16x32xf32>, vector<32x64xf32>, vector<16x64xf32> -> vector<16x64xf32>
    %c72 = arith.constant 72 : index
    %c0_128 = arith.constant 0 : index
    %308 = vector.load %arg6[%c72, %c0_128] : memref<80x64xf32, #tpu.memory_space<vmem>>, vector<1x64xf32>
    %309 = vector.broadcast %308 : vector<1x64xf32> to vector<16x64xf32>
    %310 = arith.addf %307, %309 : vector<16x64xf32>
    %311 = arith.mulf %310, %310 : vector<16x64xf32>
    %312 = arith.mulf %310, %311 : vector<16x64xf32>
    %cst_129 = arith.constant 4.471500e-02 : f32
    %313 = vector.broadcast %cst_129 : f32 to vector<16x64xf32>
    %314 = arith.mulf %313, %312 : vector<16x64xf32>
    %315 = arith.addf %310, %314 : vector<16x64xf32>
    %cst_130 = arith.constant 0.797884583 : f32
    %316 = vector.broadcast %cst_130 : f32 to vector<16x64xf32>
    %317 = arith.mulf %316, %315 : vector<16x64xf32>
    %318 = math.tanh %317 : vector<16x64xf32>
    %cst_131 = arith.constant 1.000000e+00 : f32
    %319 = vector.broadcast %cst_131 : f32 to vector<16x64xf32>
    %320 = arith.addf %319, %318 : vector<16x64xf32>
    %cst_132 = arith.constant 5.000000e-01 : f32
    %321 = vector.broadcast %cst_132 : f32 to vector<16x64xf32>
    %322 = arith.mulf %321, %320 : vector<16x64xf32>
    %323 = arith.mulf %310, %322 : vector<16x64xf32>
    %c288_133 = arith.constant 288 : index
    %c0_134 = arith.constant 0 : index
    %324 = vector.load %arg4[%c288_133, %c0_134] : memref<416x32xf32, #tpu.memory_space<vmem>>, vector<64x32xf32>
    %cst_135 = arith.constant dense<0.000000e+00> : vector<16x32xf32>
    %325 = tpu.matmul %323, %324, %cst_135 {dimension_numbers = #tpu.dot_dimension_numbers<[1], [0], [0], [1], [0, 0, 1, 1], [], []>} : vector<16x64xf32>, vector<64x32xf32>, vector<16x32xf32> -> vector<16x32xf32>
    %c355 = arith.constant 355 : index
    %c0_136 = arith.constant 0 : index
    %326 = vector.load %arg4[%c355, %c0_136] : memref<416x32xf32, #tpu.memory_space<vmem>>, vector<1x32xf32>
    %327 = vector.broadcast %326 : vector<1x32xf32> to vector<16x32xf32>
    %328 = arith.addf %325, %327 : vector<16x32xf32>
    %329 = arith.addf %305, %328 : vector<16x32xf32>
    %c356 = arith.constant 356 : index
    %c0_137 = arith.constant 0 : index
    %330 = vector.load %arg4[%c356, %c0_137] : memref<416x32xf32, #tpu.memory_space<vmem>>, vector<1x32xf32>
    %c357 = arith.constant 357 : index
    %c0_138 = arith.constant 0 : index
    %331 = vector.load %arg4[%c357, %c0_138] : memref<416x32xf32, #tpu.memory_space<vmem>>, vector<1x32xf32>
    %cst_139 = arith.constant dense<0.000000e+00> : vector<16xf32>
    %332 = vector.multi_reduction <add>, %329, %cst_139 [1] : vector<16x32xf32> to vector<16xf32>
    %333 = vector.shape_cast %332 : vector<16xf32> to vector<16x1xf32>
    %cst_140 = arith.constant 3.200000e+01 : f32
    %334 = vector.broadcast %cst_140 : f32 to vector<16x1xf32>
    %335 = arith.divf %333, %334 : vector<16x1xf32>
    %336 = vector.broadcast %335 : vector<16x1xf32> to vector<16x32xf32>
    %337 = arith.subf %329, %336 : vector<16x32xf32>
    %338 = arith.mulf %337, %337 : vector<16x32xf32>
    %cst_141 = arith.constant dense<0.000000e+00> : vector<16xf32>
    %339 = vector.multi_reduction <add>, %338, %cst_141 [1] : vector<16x32xf32> to vector<16xf32>
    %340 = vector.shape_cast %339 : vector<16xf32> to vector<16x1xf32>
    %cst_142 = arith.constant 3.200000e+01 : f32
    %341 = vector.broadcast %cst_142 : f32 to vector<16x1xf32>
    %342 = arith.divf %340, %341 : vector<16x1xf32>
    %343 = vector.broadcast %335 : vector<16x1xf32> to vector<16x32xf32>
    %344 = arith.subf %329, %343 : vector<16x32xf32>
    %cst_143 = arith.constant 9.99999996E-13 : f32
    %345 = vector.broadcast %cst_143 : f32 to vector<16x1xf32>
    %346 = arith.addf %342, %345 : vector<16x1xf32>
    %347 = math.rsqrt %346 : vector<16x1xf32>
    %348 = vector.broadcast %347 : vector<16x1xf32> to vector<16x32xf32>
    %349 = arith.mulf %344, %348 : vector<16x32xf32>
    %350 = vector.broadcast %330 : vector<1x32xf32> to vector<16x32xf32>
    %351 = arith.mulf %349, %350 : vector<16x32xf32>
    %352 = vector.broadcast %331 : vector<1x32xf32> to vector<16x32xf32>
    %353 = arith.addf %351, %352 : vector<16x32xf32>
    %354 = tpu.iota {dimensions = array<i32: 1>} : vector<2x16xi32>
    %355 = tpu.iota {dimensions = array<i32: 0>} : vector<2x16xi32>
    %c8_i32_144 = arith.constant 8 : i32
    %356 = vector.broadcast %c8_i32_144 : i32 to vector<2x16xi32>
    %357 = arith.muli %355, %356 : vector<2x16xi32>
    %358 = arith.cmpi eq, %354, %357 : vector<2x16xi32>
    %359 = arith.extui %358 : vector<2x16xi1> to vector<2x16xi32>
    %360 = arith.sitofp %359 : vector<2x16xi32> to vector<2x16xf32>
    %cst_145 = arith.constant dense<0.000000e+00> : vector<2x32xf32>
    %361 = tpu.matmul %360, %353, %cst_145 {dimension_numbers = #tpu.dot_dimension_numbers<[1], [0], [0], [1], [0, 0, 1, 1], [], []>} : vector<2x16xf32>, vector<16x32xf32>, vector<2x32xf32> -> vector<2x32xf32>
    %362 = arith.mulf %361, %361 : vector<2x32xf32>
    %363 = arith.mulf %361, %362 : vector<2x32xf32>
    %cst_146 = arith.constant 4.471500e-02 : f32
    %364 = vector.broadcast %cst_146 : f32 to vector<2x32xf32>
    %365 = arith.mulf %364, %363 : vector<2x32xf32>
    %366 = arith.addf %361, %365 : vector<2x32xf32>
    %cst_147 = arith.constant 0.797884583 : f32
    %367 = vector.broadcast %cst_147 : f32 to vector<2x32xf32>
    %368 = arith.mulf %367, %366 : vector<2x32xf32>
    %369 = math.tanh %368 : vector<2x32xf32>
    %cst_148 = arith.constant 1.000000e+00 : f32
    %370 = vector.broadcast %cst_148 : f32 to vector<2x32xf32>
    %371 = arith.addf %370, %369 : vector<2x32xf32>
    %cst_149 = arith.constant 5.000000e-01 : f32
    %372 = vector.broadcast %cst_149 : f32 to vector<2x32xf32>
    %373 = arith.mulf %372, %371 : vector<2x32xf32>
    %374 = arith.mulf %361, %373 : vector<2x32xf32>
    %c360 = arith.constant 360 : index
    %c0_150 = arith.constant 0 : index
    %375 = vector.load %arg4[%c360, %c0_150] : memref<416x32xf32, #tpu.memory_space<vmem>>, vector<32x32xf32>
    %cst_151 = arith.constant dense<0.000000e+00> : vector<2x32xf32>
    %376 = tpu.matmul %374, %375, %cst_151 {dimension_numbers = #tpu.dot_dimension_numbers<[1], [0], [0], [1], [0, 0, 1, 1], [], []>} : vector<2x32xf32>, vector<32x32xf32>, vector<2x32xf32> -> vector<2x32xf32>
    %c0_152 = arith.constant 0 : index
    %c0_153 = arith.constant 0 : index
    %377 = vector.load %arg3[%c0_152, %c0_153] : memref<2x16xf32, #tpu.memory_space<vmem>>, vector<2x16xf32>
    %378 = arith.mulf %377, %377 : vector<2x16xf32>
    %379 = arith.mulf %377, %378 : vector<2x16xf32>
    %cst_154 = arith.constant 4.471500e-02 : f32
    %380 = vector.broadcast %cst_154 : f32 to vector<2x16xf32>
    %381 = arith.mulf %380, %379 : vector<2x16xf32>
    %382 = arith.addf %377, %381 : vector<2x16xf32>
    %cst_155 = arith.constant 0.797884583 : f32
    %383 = vector.broadcast %cst_155 : f32 to vector<2x16xf32>
    %384 = arith.mulf %383, %382 : vector<2x16xf32>
    %385 = math.tanh %384 : vector<2x16xf32>
    %cst_156 = arith.constant 1.000000e+00 : f32
    %386 = vector.broadcast %cst_156 : f32 to vector<2x16xf32>
    %387 = arith.addf %386, %385 : vector<2x16xf32>
    %cst_157 = arith.constant 5.000000e-01 : f32
    %388 = vector.broadcast %cst_157 : f32 to vector<2x16xf32>
    %389 = arith.mulf %388, %387 : vector<2x16xf32>
    %390 = arith.mulf %377, %389 : vector<2x16xf32>
    %c392_158 = arith.constant 392 : index
    %c0_159 = arith.constant 0 : index
    %391 = vector.load %arg4[%c392_158, %c0_159] : memref<416x32xf32, #tpu.memory_space<vmem>>, vector<16x32xf32>
    %cst_160 = arith.constant dense<0.000000e+00> : vector<2x32xf32>
    %392 = tpu.matmul %390, %391, %cst_160 {dimension_numbers = #tpu.dot_dimension_numbers<[1], [0], [0], [1], [0, 0, 1, 1], [], []>} : vector<2x16xf32>, vector<16x32xf32>, vector<2x32xf32> -> vector<2x32xf32>
    %393 = arith.addf %376, %392 : vector<2x32xf32>
    %c408 = arith.constant 408 : index
    %c0_161 = arith.constant 0 : index
    %394 = vector.load %arg4[%c408, %c0_161] : memref<416x32xf32, #tpu.memory_space<vmem>>, vector<1x32xf32>
    %395 = vector.broadcast %394 : vector<1x32xf32> to vector<2x32xf32>
    %396 = arith.addf %393, %395 : vector<2x32xf32>
    %c409 = arith.constant 409 : index
    %c0_162 = arith.constant 0 : index
    %397 = vector.load %arg4[%c409, %c0_162] : memref<416x32xf32, #tpu.memory_space<vmem>>, vector<1x32xf32>
    %398 = arith.mulf %396, %396 : vector<2x32xf32>
    %399 = arith.mulf %396, %398 : vector<2x32xf32>
    %cst_163 = arith.constant 4.471500e-02 : f32
    %400 = vector.broadcast %cst_163 : f32 to vector<2x32xf32>
    %401 = arith.mulf %400, %399 : vector<2x32xf32>
    %402 = arith.addf %396, %401 : vector<2x32xf32>
    %cst_164 = arith.constant 0.797884583 : f32
    %403 = vector.broadcast %cst_164 : f32 to vector<2x32xf32>
    %404 = arith.mulf %403, %402 : vector<2x32xf32>
    %405 = math.tanh %404 : vector<2x32xf32>
    %cst_165 = arith.constant 1.000000e+00 : f32
    %406 = vector.broadcast %cst_165 : f32 to vector<2x32xf32>
    %407 = arith.addf %406, %405 : vector<2x32xf32>
    %cst_166 = arith.constant 5.000000e-01 : f32
    %408 = vector.broadcast %cst_166 : f32 to vector<2x32xf32>
    %409 = arith.mulf %408, %407 : vector<2x32xf32>
    %410 = arith.mulf %396, %409 : vector<2x32xf32>
    %411 = vector.broadcast %397 : vector<1x32xf32> to vector<2x32xf32>
    %412 = arith.mulf %410, %411 : vector<2x32xf32>
    %cst_167 = arith.constant dense<0.000000e+00> : vector<2xf32>
    %413 = vector.multi_reduction <add>, %412, %cst_167 [1] : vector<2x32xf32> to vector<2xf32>
    %414 = vector.shape_cast %413 : vector<2xf32> to vector<2x1xf32>
    %c410 = arith.constant 410 : index
    %c0_168 = arith.constant 0 : index
    %415 = vector.load %arg4[%c410, %c0_168] : memref<416x32xf32, #tpu.memory_space<vmem>>, vector<1x32xf32>
    %cst_169 = arith.constant dense<0xFF800000> : vector<1xf32>
    %416 = vector.multi_reduction <maximumf>, %415, %cst_169 [1] : vector<1x32xf32> to vector<1xf32>
    %417 = vector.shape_cast %416 : vector<1xf32> to vector<1x1xf32>
    %418 = vector.broadcast %417 : vector<1x1xf32> to vector<2x1xf32>
    %419 = arith.addf %414, %418 : vector<2x1xf32>
    %c0_170 = arith.constant 0 : index
    %c0_171 = arith.constant 0 : index
    %420 = vector.load %arg7[%c0_170, %c0_171] : memref<2x1xf32, #tpu.memory_space<vmem>>, vector<2x1xf32>
    tpu.vector_store %arg7[%c0_170, %c0_171], %419 {strides = array<i32>} : memref<2x1xf32, #tpu.memory_space<vmem>>, vector<2x1xf32>,
    return
  }
  func.func @transform_0(%arg0: i32) -> (i32, i32) {
    %c0_i32 = arith.constant 0 : i32
    %c0_i32_0 = arith.constant 0 : i32
    %c0_i32_1 = arith.constant 0 : i32
    return %c0_i32, %c0_i32_0 : i32, i32
  }
  func.func @transform_1(%arg0: i32) -> (i32, i32) {
    %c0_i32 = arith.constant 0 : i32
    %c0_i32_0 = arith.constant 0 : i32
    %c0_i32_1 = arith.constant 0 : i32
    return %c0_i32, %c0_i32_0 : i32, i32
  }
  func.func @transform_2(%arg0: i32) -> (i32, i32) {
    %c0_i32 = arith.constant 0 : i32
    %c0_i32_0 = arith.constant 0 : i32
    %c0_i32_1 = arith.constant 0 : i32
    return %c0_i32, %c0_i32_0 : i32, i32
  }
  func.func @transform_3(%arg0: i32) -> (i32, i32) {
    %c0_i32 = arith.constant 0 : i32
    %c0_i32_0 = arith.constant 0 : i32
    %c0_i32_1 = arith.constant 0 : i32
    return %c0_i32, %c0_i32_0 : i32, i32
  }
  func.func @transform_4(%arg0: i32) -> (i32, i32) {
    %c0_i32 = arith.constant 0 : i32
    %c0_i32_0 = arith.constant 0 : i32
    %c0_i32_1 = arith.constant 0 : i32
    return %c0_i32, %c0_i32_0 : i32, i32
  }
  func.func @transform_5(%arg0: i32) -> (i32, i32) {
    %c0_i32 = arith.constant 0 : i32
    %c0_i32_0 = arith.constant 0 : i32
    %c0_i32_1 = arith.constant 0 : i32
    return %c0_i32, %c0_i32_0 : i32, i32
  }
  func.func @transform_6(%arg0: i32) -> (i32, i32) {
    %c0_i32 = arith.constant 0 : i32
    %c0_i32_0 = arith.constant 0 : i32
    %c0_i32_1 = arith.constant 0 : i32
    return %c0_i32, %c0_i32_0 : i32, i32
  }
}

</mosaic_0001>

<bundles_post_ra>
// kernel: forward.1
= control target key start
LH: loop header
LB: loop body
LE: loop exit
PB: predicated region body
PF: predicated region fallthrough
CT: control target
= control target key end

     0   :  { %v3907_v0 = vmov 0   ;;  %v25_v19 = vlaneseq  ;;  %v3908_v22 = vmov 1.0   ;;  %vm134_vm2 = vcmask 261120   ;;  %s4550_s0 = inlined_call_operand.vmem [shape: s32[16,1], index: 0, kind: input, shape index: {}]   ;;  %s4551_s3 = inlined_call_operand.vmem [shape: f32[416,32], index: 3, kind: input, shape index: {}]   ;;  %s4552_s4 = inlined_call_operand.vmem [shape: f32[400,16], index: 4, kind: input, shape index: {}]   ;;  %s4553_s1 = inlined_call_operand.vmem [shape: f32[1,16], index: 1, kind: input, shape index: {}]   ;;  %s4554_s5 = inlined_call_operand.vmem [shape: f32[80,64], index: 5, kind: input, shape index: {}]   ;;  %s4555_s2 = inlined_call_operand.vmem [shape: f32[2,16], index: 2, kind: input, shape index: {}]   ;;  %s4556_s6 = inlined_call_operand.vmem [shape: f32[2,1], index: 6, kind: output, shape index: {}]  }
   0x1   :  { %3840 = vset.pattern.permute.xlu0 %v3907_v0  ;;  %v23_v1 = vld [vmem:[%s4550_s0] sm:$0xff]  ;;  %v54_v2 = vld [vmem:[%s4551_s3 + $0x78] sm:$0xff]  ;;  %v53_v3 = vld [vmem:[%s4551_s3 + $0x70] sm:$0xff]  ;;  %vm470_vm3 = vcmask 130048   ;;  %vm1447_vm8 = vcmask 523264   ;;  %vm3910_vm9 = vmmov 0  }
   0x2   :  { %28 = vperm.xlu0 %3840, %v23_v1   ;;  %3500 = vmatprep.subr.mxu0 %v54_v2  ;;  %v24_v4 = vld [vmem:[%s4550_s0 + $0x8] sm:$0xff]  ;;  %v51_v6 = vld [vmem:[%s4551_s3 + $0x60] sm:$0xff]  ;;  %v50_v7 = vld [vmem:[%s4551_s3 + $0x58] sm:$0xff]  ;;  %v4001_v20 = vand.u32 127, %v25_v19  ;;  %vm3202_vm11 = vcmask 253952   ;;  %vm3197_vm12 = vcmask 254976  }
   0x3   :  { %3501 = vmatpush3.msra.mxu0 %v54_v2  ;;  %v52_v5 = vld [vmem:[%s4551_s3 + $0x68] sm:$0xff]  ;;  %v49_v8 = vld [vmem:[%s4551_s3 + $0x50] sm:$0xff]  ;;  %v47_v10 = vld [vmem:[%s4551_s3 + $0x40] sm:$0xff]  ;;  %vm3211_vm13 = vcmask 1024  }
   0x4   :  { %3502 = vmatprep.subr.mxu0 %v53_v3  ;;  %v48_v9 = vld [vmem:[%s4551_s3 + $0x48] sm:$0xff]  ;;  %v46_v11 = vld [vmem:[%s4551_s3 + $0x38] sm:$0xff]  ;;  %v45_v12 = vld [vmem:[%s4551_s3 + $0x30] sm:$0xff]  ;;  %vm194_vm4 = vcmp.ge.s32.totalorder %v4001_v20, 8  ;;  %vm195_vm5 = vcmp.lt.s32.totalorder %v4001_v20, 16  ;;  %vm184_vm6 = vcmp.lt.s32.totalorder %v4001_v20, 8 }
   0x5   :  { %3503 = vmatpush3.msra.mxu0 %v53_v3  ;;  %v44_v13 = vld [vmem:[%s4551_s3 + $0x28] sm:$0xff]  ;;  %v43_v14 = vld [vmem:[%s4551_s3 + $0x20] sm:$0xff]  ;;  %v42_v15 = vld [vmem:[%s4551_s3 + $0x18] sm:$0xff] }
   0x6   :  { %31 = vperm.xlu0 %3840, %v24_v4   ;;  %3504 = vmatprep.subr.mxu0 %v52_v5  ;;  %v41_v16 = vld [vmem:[%s4551_s3 + $0x10] sm:$0xff]  ;;  %v40_v17 = vld [vmem:[%s4551_s3 + $0x8] sm:$0xff]  ;;  %v39_v18 = vld [vmem:[%s4551_s3] sm:$0xff] }
   0x7   :  { %3505 = vmatpush3.msra.mxu0 %v52_v5  ;;  %v55_v25 = vld [vmem:[%s4551_s3 + $0x80] sm:$0xff]  ;;  %v56_v26 = vld [vmem:[%s4551_s3 + $0x88] sm:$0xff]  ;;  %v215_v42 = vld [vmem:[%s4552_s4 + $0x18] sm:$0xff] }
   0x8   :  { %3506 = vmatprep.subr.mxu0 %v51_v6  ;;  %3535 = vmatprep.subr.mxu1 %v215_v42  ;;  %v754_v43 = vld [vmem:[%s4552_s4 + $0x78] sm:$0xff]  ;;  %v214_v44 = vld [vmem:[%s4552_s4 + $0x10] sm:$0xff]  ;;  %v213_v46 = vld [vmem:[%s4552_s4 + $0x8] sm:$0xff] }
   0x9   :  { %3507 = vmatpush3.msra.mxu0 %v51_v6  ;;  %3536 = vmatpush3.msra.mxu1 %v215_v42  ;;  %v753_v45 = vld [vmem:[%s4552_s4 + $0x70] sm:$0xff]  ;;  %v752_v47 = vld [vmem:[%s4552_s4 + $0x68] sm:$0xff]  ;;  %v212_v48 = vld [vmem:[%s4552_s4] sm:$0xff] }
   0xa   :  { %3508 = vmatprep.subr.mxu0 %v50_v7  ;;  %3537 = vmatprep.subr.mxu1 %v214_v44  ;;  %v751_v49 = vld [vmem:[%s4552_s4 + $0x60] sm:$0xff]  ;;  %v305_v50 = vld [vmem:[%s4552_s4 + $0x58] sm:$0xff]  ;;  %v3221_v58 = vld [vmem:[%s4551_s3 + $0x90] ss:$0 sm:$0xff] }
   0xb   :  { %3509 = vmatpush3.msra.mxu0 %v50_v7  ;;  %3538 = vmatpush3.msra.mxu1 %v214_v44  ;;  %v3222_v60 = vld [vmem:[%s4551_s3 + $0x91] ss:$0 sm:$0xff]  ;;  %v303_v4 = vld [vmem:[%s4552_s4 + $0x48] sm:$0xff]  ;;  %v302_v5 = vld [vmem:[%s4552_s4 + $0x40] sm:$0xff] }
   0xc   :  { %3510 = vmatprep.subr.mxu0 %v49_v8  ;;  %3539 = vmatprep.subr.mxu1 %v213_v46  ;;  %v304_v3 = vld [vmem:[%s4552_s4 + $0x50] sm:$0xff]  ;;  %v389_v6 = vld [vmem:[%s4552_s4 + $0x98] sm:$0xff]  ;;  %vm196_vm7 = vmand %vm194_vm4, %vm195_vm5 }
   0xd   :  { %3511 = vmatpush3.msra.mxu0 %v49_v8  ;;  %3540 = vmatpush3.msra.mxu1 %v213_v46  ;;  %v388_v7 = vld [vmem:[%s4552_s4 + $0x90] sm:$0xff]  ;;  %v387_v8 = vld [vmem:[%s4552_s4 + $0x88] sm:$0xff] }
   0xe   :  { %3512 = vmatprep.subr.mxu0 %v48_v9  ;;  %3541 = vmatprep.subr.mxu1 %v212_v48 }
   0xf   :  { %3513 = vmatpush3.msra.mxu0 %v48_v9  ;;  %3542 = vmatpush3.msra.mxu1 %v212_v48  ;;  %v386_v9 = vld [vmem:[%s4552_s4 + $0x80] sm:$0xff] }
  0x10   :  { %3514 = vmatprep.subr.mxu0 %v47_v10  ;;  %3546 = vmatprep.subr.mxu1 %v305_v50 }
  0x11   :  { %3515 = vmatpush3.msra.mxu0 %v47_v10  ;;  %v3241_v10 = vld [vmem:[%s4552_s4 + $0x183] ss:$0 sm:$0xff] }
  0x12   :  { %3516 = vmatprep.subr.mxu0 %v46_v11 }
  0x13   :  { %3517 = vmatpush3.msra.mxu0 %v46_v11 }
  0x14   :  { %3518 = vmatprep.subr.mxu0 %v45_v12 }
  0x15   :  { %3519 = vmatpush3.msra.mxu0 %v45_v12 }
  0x16   :  { %3520 = vmatprep.subr.mxu0 %v44_v13 }
  0x17   :  { %3521 = vmatpush3.msra.mxu0 %v44_v13 }
  0x18   :  { %3522 = vmatprep.subr.mxu0 %v43_v14 }
  0x19   :  { %3523 = vmatpush3.msra.mxu0 %v43_v14  ;;  %v3223_v14 = vld [vmem:[%s4552_s4 + $0x180] ss:$0 sm:$0xff] }
  0x1a   :  { %3524 = vmatprep.subr.mxu0 %v42_v15 }
  0x1b   :  { %3525 = vmatpush3.msra.mxu0 %v42_v15 }
  0x1c   :  { %3526 = vmatprep.subr.mxu0 %v41_v16 }
  0x1d   :  { %3527 = vmatpush3.msra.mxu0 %v41_v16 }
  0x1e   :  { %3528 = vmatprep.subr.mxu0 %v40_v17 }
  0x1f   :  { %3529 = vmatpush3.msra.mxu0 %v40_v17 }
  0x20   :  { %3530 = vmatprep.subr.mxu0 %v39_v18 }
  0x21   :  { %3531 = vmatpush3.msra.mxu0 %v39_v18 }
  0x22   :  { %3593 = vmatprep.subr.mxu0 %v754_v43 }
  0x7d   :  { %v29_v21 = vpop.permute.xlu0 %28 }
  0x7e   :  { %vm33_vm0 = vcmp.eq.s32.totalorder %v29_v21, %v4001_v20  ;;  %v3226_v21 = vld [vmem:[%s4552_s4 + $0x182] ss:$0 sm:$0xff] }
  0x7f   :  { %3532 = vmatprep.mubr.msk.f32.mxu0 %vm33_vm0, %v3908_v22 }
  0x81   :  { %v32_v23 = vpop.permute.xlu0 %31 }
  0x82   :  { %vm34_vm1 = vcmp.eq.s32.totalorder %v32_v23, %v4001_v20 }
  0x83   :  { %3533 = vmatmul.mubr.msk.f32.vlgmr.msra.gmra.mxu0 %vm34_vm1, %v3908_v22 }
  0x84   :  { %3594 = vmatpush3.msra.mxu0 %v754_v43 }
  0x85   :  { %3595 = vmatprep.subr.mxu0 %v753_v45 }
  0x86   :  { %3596 = vmatpush3.msra.mxu0 %v753_v45 }
  0x87   :  { %3597 = vmatprep.subr.mxu0 %v752_v47 }
  0x88   :  { %3598 = vmatpush3.msra.mxu0 %v752_v47 }
  0x89   :  { %3599 = vmatprep.subr.mxu0 %v751_v49 }
  0x8a   :  { %3600 = vmatpush3.msra.mxu0 %v751_v49 }
 0x143   :  { %v3534_v24 = vpop.f32.mrf.mxu0 }
 0x144   :  { %v129_v29 = vadd.f32 %v3534_v24, %v56_v26  ;;  %v3229_v26 = vld [vmem:[%s4552_s4 + $0x184] ss:$0 sm:$0xff] }
 0x145   :  { %v123_v27 = vpop.f32.mrf.mxu0 }
 0x146   :  { %v124_v28 = vadd.f32 %v123_v27, %v55_v25  ;;  %v138_v31 = vsel %vm134_vm2, %v129_v29, 0.0 }
 0x148   :  { %v135_v30 = vsel %vm134_vm2, %v124_v28, 0.0 }
 0x149   :  { %136 = vadd.xlane.f32.xlu1 %v135_v30 }
 0x14d   :  { %139 = vadd.xlane.f32.xlu1 %v138_v31 }
 0x1d2   :  { %v137_v32 = vpop.xlane.xlu1 %136 }
 0x1d3   :  { %v142_v33 = vmul.f32 0.03125, %v137_v32  ;;  %v201_v32 = vld [vmem:[%s4553_s1] sm:$0x1] }
 0x1d5   :  { %v144_v34 = vsub.f32 %v124_v28, %v142_v33  ;;  %v4115_v33 = vshrl.u32 %v25_v19, 7 }
 0x1d6   :  { %v140_v35 = vpop.xlane.xlu1 %139 }
 0x1d7   :  { %v143_v36 = vmul.f32 0.03125, %v140_v35  ;;  %v146_v37 = vmul.f32 %v144_v34, %v144_v34 }
 0x1d9   :  { %v145_v38 = vsub.f32 %v129_v29, %v143_v36  ;;  %v148_v39 = vsel %vm134_vm2, %v146_v37, 0.0  ;;  %v207_v36 = vsub.s32 0, %v4115_v33 }
 0x1da   :  { %149 = vadd.xlane.f32.xlu0 %v148_v39 }
 0x1db   :  { %v147_v40 = vmul.f32 %v145_v38, %v145_v38 }
 0x1dd   :  { %v151_v41 = vsel %vm134_vm2, %v147_v40, 0.0 }
 0x1de   :  { %152 = vadd.xlane.f32.xlu1 %v151_v41 }
 0x263   :  { %v150_v51 = vpop.xlane.xlu0 %149 }
 0x264   :  { %v154_v52 = vmul.f32 0.03125, %v150_v51 }
 0x266   :  { %v156_v53 = vadd.f32 1e-12, %v154_v52 }
 0x267   :  { %v153_v54 = vpop.xlane.xlu1 %152 }
 0x268   :  { %3841 = vrsqrt.f32 %v156_v53  ;;  %v155_v55 = vmul.f32 0.03125, %v153_v54 }
 0x26a   :  { %v157_v56 = vadd.f32 1e-12, %v155_v55 }
 0x26c   :  { %3843 = vrsqrt.f32 %v157_v56 }
 0x275   :  { %v3842_v57 = vpop.eup %3841 }
 0x276   :  { %v160_v59 = vmul.f32 %v3842_v57, %v144_v34  ;;  %v202_v34 = vsub.f32 1.0, %v201_v32  ;;  %v670_v57 = vld [vmem:[%s4552_s4 + $0x38] sm:$0xff] }
 0x278   :  { %v166_v61 = vmul.f32 %v3221_v58, %v160_v59  ;;  %v203_v35 = vmul.f32 -1e+09, %v202_v34 }
 0x279   :  { %v3844_v62 = vpop.eup %3843 }
 0x27a   :  { %v4048_v63 = vadd.f32 %v3222_v60, %v166_v61  ;;  %v161_v0 = vmul.f32 %v3844_v62, %v145_v38  ;;  %v208_v38 = vrot.slane %v203_v35, %v207_v36 }
 0x27c   :  { %v167_v1 = vmul.f32 %v3221_v58, %v161_v0  ;;  %3543 = vmatprep.mubr.msk.f32.mxu1 %vm134_vm2, %v4048_v63  ;;  %3601 = vmatprep.mubr.msk.f32.mxu0 %vm134_vm2, %v4048_v63  ;;  %v4123_v40 = vsel %vm184_vm6, %v208_v38, -1e+09  ;;  %v4125_v42 = vsel %vm196_vm7, %v208_v38, -1e+09 }
 0x27e   :  { %v4054_v2 = vadd.f32 %v3222_v60, %v167_v1  ;;  %v669_v1 = vld [vmem:[%s4552_s4 + $0x30] sm:$0xff] }
 0x280   :  { %3544 = vmatmul.mubr.msk.f32.vlgmr.msra.gmra.mxu1 %vm134_vm2, %v4054_v2  ;;  %3602 = vmatmul.mubr.msk.f32.vlgmr.msra.gmra.mxu0 %vm134_vm2, %v4054_v2 }
 0x281   :  { %3547 = vmatpush3.msra.mxu1 %v305_v50  ;;  %3554 = vmatprep.mubr.msk.f32.mxu1 %vm134_vm2, %v4048_v63 }
 0x282   :  { %3548 = vmatprep.subr.mxu1 %v304_v3 }
 0x283   :  { %3549 = vmatpush3.msra.mxu1 %v304_v3  ;;  %v668_v3 = vld [vmem:[%s4552_s4 + $0x28] sm:$0xff] }
 0x284   :  { %3550 = vmatprep.subr.mxu1 %v303_v4 }
 0x285   :  { %3551 = vmatpush3.msra.mxu1 %v303_v4  ;;  %v667_v4 = vld [vmem:[%s4552_s4 + $0x20] sm:$0xff] }
 0x286   :  { %3552 = vmatprep.subr.mxu1 %v302_v5 }
 0x287   :  { %3553 = vmatpush3.msra.mxu1 %v302_v5  ;;  %v838_v5 = vld [vmem:[%s4552_s4 + $0xb8] sm:$0xff] }
 0x288   :  { %3555 = vmatmul.mubr.msk.f32.vlgmr.msra.gmra.mxu1 %vm134_vm2, %v4054_v2  ;;  %3557 = vmatprep.subr.mxu1 %v389_v6 }
 0x289   :  { %3558 = vmatpush3.msra.mxu1 %v389_v6  ;;  %3565 = vmatprep.mubr.msk.f32.mxu1 %vm134_vm2, %v4048_v63  ;;  %v837_v6 = vld [vmem:[%s4552_s4 + $0xb0] sm:$0xff] }
 0x28a   :  { %3559 = vmatprep.subr.mxu1 %v388_v7 }
 0x28b   :  { %3560 = vmatpush3.msra.mxu1 %v388_v7  ;;  %v836_v7 = vld [vmem:[%s4552_s4 + $0xa8] sm:$0xff] }
 0x28c   :  { %3561 = vmatprep.subr.mxu1 %v387_v8 }
 0x28d   :  { %3562 = vmatpush3.msra.mxu1 %v387_v8  ;;  %v835_v8 = vld [vmem:[%s4552_s4 + $0xa0] sm:$0xff] }
 0x28e   :  { %3563 = vmatprep.subr.mxu1 %v386_v9 }
 0x28f   :  { %3564 = vmatpush3.msra.mxu1 %v386_v9 }
 0x290   :  { %3566 = vmatmul.mubr.msk.f32.vlgmr.msra.gmra.mxu1 %vm134_vm2, %v4054_v2 }
 0x340   :  { %v3545_v11 = vpop.f32.mrf.mxu1  ;;  %v3603_v12 = vpop.f32.mrf.mxu0 }
 0x341   :  { %v832_v13 = vadd.f32 %v3603_v12, %v3241_v10  ;;  %v299_v28 = vadd.f32 %v3545_v11, %v3223_v14  ;;  %v3238_v12 = vld [vmem:[%s4552_s4 + $0x181] ss:$0 sm:$0xff] }
 0x342   :  { %v293_v15 = vpop.f32.mrf.mxu1  ;;  %v826_v16 = vpop.f32.mrf.mxu0 }
 0x343   :  { %v294_v17 = vadd.f32 %v3223_v14, %v293_v15  ;;  %v827_v18 = vadd.f32 %v3241_v10, %v826_v16  ;;  %3615 = vmatprep.subr.msk.mxu0 %vm470_vm3, %v832_v13  ;;  %v3244_v16 = vld [vmem:[%s4552_s4 + $0x185] ss:$0 sm:$0xff] }
 0x344   :  { %3616 = vmatpush3.xpose.msk.msra.mxu0 %vm470_vm3, %v832_v13 }
 0x345   :  { %3572 = vmatprep.mubr.msk.f32.mxu1 %vm470_vm3, %v294_v17  ;;  %3617 = vmatprep.subr.msk.mxu0 %vm470_vm3, %v827_v18 }
 0x348   :  { %v3556_v22 = vpop.f32.mrf.mxu1  ;;  %3618 = vmatpush3.xpose.msk.msra.mxu0 %vm470_vm3, %v827_v18 }
 0x349   :  { %v383_v23 = vadd.f32 %v3556_v22, %v3226_v21 }
 0x34a   :  { %v377_v24 = vpop.f32.mrf.mxu1 }
 0x34b   :  { %v378_v25 = vadd.f32 %v3226_v21, %v377_v24  ;;  %3568 = vmatprep.subr.msk.mxu1 %vm470_vm3, %v383_v23 }
 0x34c   :  { %3569 = vmatpush3.xpose.msk.msra.mxu1 %vm470_vm3, %v383_v23 }
 0x34d   :  { %3570 = vmatprep.subr.msk.mxu1 %vm470_vm3, %v378_v25 }
 0x350   :  { %v3567_v27 = vpop.f32.mrf.mxu1  ;;  %3571 = vmatpush3.xpose.msk.msra.mxu1 %vm470_vm3, %v378_v25 }
 0x351   :  { %v467_v29 = vadd.f32 %v3567_v27, %v3229_v26 }
 0x352   :  { %v461_v30 = vpop.f32.mrf.mxu1 }
 0x353   :  { %v462_v31 = vadd.f32 %v3229_v26, %v461_v30  ;;  %3573 = vmatmul.mubr.msk.f32.vlgmr.msra.gmra.mxu1 %vm470_vm3, %v299_v28  ;;  %3575 = vmatprep.subr.mxu1 %v467_v29 }
 0x354   :  { %3576 = vmatpush3.msra.mxu1 %v467_v29 }
 0x355   :  { %3577 = vmatprep.subr.mxu1 %v462_v31 }
 0x356   :  { %3578 = vmatpush3.msra.mxu1 %v462_v31 }
 0x357   :  { %3582 = vmatprep.subr.mxu1 %v670_v57 }
 0x413   :  { %v3574_v37 = vpop.f32.mrf.mxu1 }
 0x414   :  { %v559_v19 = vmul.f32 0.25, %v3574_v37 }
 0x415   :  { %v549_v39 = vpop.f32.mrf.mxu1 }
 0x416   :  { %v558_v41 = vmul.f32 0.25, %v549_v39  ;;  %v561_v45 = vadd.f32 %v559_v19, %v4125_v42 }
 0x418   :  { %v560_v43 = vadd.f32 %v558_v41, %v4123_v40  ;;  %v565_v46 = vsel %vm470_vm3, %v561_v45, -inf }
 0x41a   :  { %v562_v44 = vsel %vm470_vm3, %v560_v43, -inf }
 0x41b   :  { %563 = vmax.xlane.f32.xlu1 %v562_v44  ;;  %v666_v44 = vld [vmem:[%s4551_s3 + $0xa0] sm:$0xff] }
 0x41f   :  { %566 = vmax.xlane.f32.xlu1 %v565_v46 }
 0x4a4   :  { %v564_v47 = vpop.xlane.xlu1 %563 }
 0x4a5   :  { %v568_v48 = vsub.f32 %v560_v43, %v564_v47 }
 0x4a7   :  { %v570_v49 = vmul.f32 1.442695, %v568_v48 }
 0x4a8   :  { %v567_v50 = vpop.xlane.xlu1 %566 }
 0x4a9   :  { %3845 = vpow2.f32 %v570_v49  ;;  %v569_v51 = vsub.f32 %v561_v45, %v567_v50 }
 0x4ab   :  { %v572_v52 = vmul.f32 1.442695, %v569_v51  ;;  %v665_v51 = vld [vmem:[%s4551_s3 + $0x98] sm:$0xff] }
 0x4ad   :  { %3847 = vpow2.f32 %v572_v52  ;;  %v1114_v52 = vld [vmem:[%s4551_s3 + $0xb0] sm:$0xff] }
 0x4ae   :  { %3629 = vmatprep.subr.mxu0 %v1114_v52 }
 0x4b6   :  { %v3846_v53 = vpop.eup %3845 }
 0x4b7   :  { %v574_v54 = vsel %vm470_vm3, %v3846_v53, 0.0 }
 0x4b8   :  { %575 = vadd.xlane.f32.xlu1 %v574_v54 }
 0x4ba   :  { %v3848_v55 = vpop.eup %3847 }
 0x4bb   :  { %v577_v56 = vsel %vm470_vm3, %v3848_v55, 0.0 }
 0x4bc   :  { %578 = vadd.xlane.f32.xlu1 %v577_v56 }
 0x541   :  { %v576_v58 = vpop.xlane.xlu1 %575 }
 0x542   :  { %3849 = vrcp.f32 %v576_v58  ;;  %v3257_v58 = vld [vmem:[%s4551_s3 + $0xf8] ss:$0 sm:$0xff] }
 0x545   :  { %v579_v59 = vpop.xlane.xlu1 %578 }
 0x546   :  { %3851 = vrcp.f32 %v579_v59 }
 0x54f   :  { %v3850_v60 = vpop.eup %3849 }
 0x550   :  { %v582_v61 = vmul.f32 %v3850_v60, %v3846_v53  ;;  %v1113_v53 = vld [vmem:[%s4551_s3 + $0xa8] sm:$0xff] }
 0x552   :  { %3579 = vmatprep.mubr.msk.f32.mxu1 %vm470_vm3, %v582_v61 }
 0x553   :  { %v3852_v62 = vpop.eup %3851 }
 0x554   :  { %v583_v0 = vmul.f32 %v3852_v62, %v3848_v55 }
 0x556   :  { %3580 = vmatmul.mubr.msk.f32.vlgmr.msra.gmra.mxu1 %vm470_vm3, %v583_v0 }
 0x557   :  { %3583 = vmatpush3.msra.mxu1 %v670_v57  ;;  %3590 = vmatprep.mubr.msk.f32.mxu1 %vm134_vm2, %v4048_v63 }
 0x558   :  { %3584 = vmatprep.subr.mxu1 %v669_v1 }
 0x559   :  { %3585 = vmatpush3.msra.mxu1 %v669_v1 }
 0x55a   :  { %3586 = vmatprep.subr.mxu1 %v668_v3 }
 0x55b   :  { %3587 = vmatpush3.msra.mxu1 %v668_v3 }
 0x55c   :  { %3588 = vmatprep.subr.mxu1 %v667_v4 }
 0x55d   :  { %3589 = vmatpush3.msra.mxu1 %v667_v4 }
 0x55e   :  { %3591 = vmatmul.mubr.msk.f32.vlgmr.msra.gmra.mxu1 %vm134_vm2, %v4054_v2  ;;  %3604 = vmatprep.subr.mxu1 %v838_v5 }
 0x55f   :  { %3605 = vmatpush3.msra.mxu1 %v838_v5  ;;  %3612 = vmatprep.mubr.msk.f32.mxu1 %vm134_vm2, %v4048_v63 }
 0x560   :  { %3606 = vmatprep.subr.mxu1 %v837_v6 }
 0x561   :  { %3607 = vmatpush3.msra.mxu1 %v837_v6 }
 0x562   :  { %3608 = vmatprep.subr.mxu1 %v836_v7 }
 0x563   :  { %3609 = vmatpush3.msra.mxu1 %v836_v7 }
 0x564   :  { %3610 = vmatprep.subr.mxu1 %v835_v8 }
 0x565   :  { %3611 = vmatpush3.msra.mxu1 %v835_v8 }
 0x566   :  { %3613 = vmatmul.mubr.msk.f32.vlgmr.msra.gmra.mxu1 %vm134_vm2, %v4054_v2 }
 0x616   :  { %v3581_v9 = vpop.f32.mrf.mxu1 }
 0x618   :  { %v656_v10 = vpop.f32.mrf.mxu1 }
 0x61e   :  { %v3592_v11 = vpop.f32.mrf.mxu1 }
 0x61f   :  { %v748_v15 = vadd.f32 %v3592_v11, %v3238_v12 }
 0x620   :  { %v742_v13 = vpop.f32.mrf.mxu1 }
 0x621   :  { %v743_v14 = vadd.f32 %v3238_v12, %v742_v13 }
 0x623   :  { %3619 = vmatprep.mubr.msk.f32.mxu0 %vm470_vm3, %v743_v14 }
 0x624   :  { %3620 = vmatmul.mubr.msk.f32.vlgmr.msra.gmra.mxu0 %vm470_vm3, %v748_v15 }
 0x625   :  { %3630 = vmatpush3.msra.mxu0 %v1114_v52 }
 0x626   :  { %v3614_v17 = vpop.f32.mrf.mxu1  ;;  %3631 = vmatprep.subr.mxu0 %v1113_v53 }
 0x627   :  { %v916_v18 = vadd.f32 %v3614_v17, %v3244_v16  ;;  %3632 = vmatpush3.msra.mxu0 %v1113_v53  ;;  %v1327_v17 = vld [vmem:[%s4554_s5 + $0x8] sm:$0xff] }
 0x628   :  { %v910_v21 = vpop.f32.mrf.mxu1 }
 0x629   :  { %v911_v22 = vadd.f32 %v3244_v16, %v910_v21  ;;  %3622 = vmatprep.subr.mxu1 %v916_v18  ;;  %v1328_v16 = vld [vmem:[%s4554_s5 + $0x10] sm:$0xff] }
 0x62a   :  { %3623 = vmatpush3.msra.mxu1 %v916_v18  ;;  %v1326_v18 = vld [vmem:[%s4554_s5] sm:$0xff] }
 0x62b   :  { %3624 = vmatprep.subr.mxu1 %v911_v22 }
 0x62c   :  { %3625 = vmatpush3.msra.mxu1 %v911_v22 }
 0x62d   :  { %3636 = vmatprep.subr.mxu1 %v666_v44 }
 0x6e4   :  { %v3621_v23 = vpop.f32.mrf.mxu0 }
 0x6e5   :  { %v1007_v25 = vmul.f32 0.25, %v3621_v23 }
 0x6e6   :  { %v997_v24 = vpop.f32.mrf.mxu0 }
 0x6e7   :  { %v1006_v26 = vmul.f32 0.25, %v997_v24  ;;  %v1009_v29 = vadd.f32 %v1007_v25, %v4125_v42 }
 0x6e9   :  { %v1008_v27 = vadd.f32 %v1006_v26, %v4123_v40  ;;  %v1013_v30 = vsel %vm470_vm3, %v1009_v29, -inf }
 0x6eb   :  { %v1010_v28 = vsel %vm470_vm3, %v1008_v27, -inf }
 0x6ec   :  { %1011 = vmax.xlane.f32.xlu1 %v1010_v28  ;;  %v3258_v28 = vld [vmem:[%s4551_s3 + $0xf9] ss:$0 sm:$0xff] }
 0x6f0   :  { %1014 = vmax.xlane.f32.xlu1 %v1013_v30 }
 0x775   :  { %v1012_v31 = vpop.xlane.xlu1 %1011 }
 0x776   :  { %v1016_v32 = vsub.f32 %v1008_v27, %v1012_v31 }
 0x778   :  { %v1018_v34 = vmul.f32 1.442695, %v1016_v32 }
 0x779   :  { %v1015_v35 = vpop.xlane.xlu1 %1014 }
 0x77a   :  { %3853 = vpow2.f32 %v1018_v34  ;;  %v1017_v37 = vsub.f32 %v1009_v29, %v1015_v35  ;;  %v3259_v34 = vld [vmem:[%s4551_s3 + $0xfa] ss:$0 sm:$0xff] }
 0x77c   :  { %v1020_v38 = vmul.f32 1.442695, %v1017_v37 }
 0x77e   :  { %3855 = vpow2.f32 %v1020_v38 }
 0x787   :  { %v3854_v39 = vpop.eup %3853 }
 0x788   :  { %v1022_v19 = vsel %vm470_vm3, %v3854_v39, 0.0 }
 0x789   :  { %1023 = vadd.xlane.f32.xlu1 %v1022_v19  ;;  %v1440_v19 = vld [vmem:[%s4551_s3 + $0xe8] sm:$0xff] }
 0x78b   :  { %v3856_v41 = vpop.eup %3855 }
 0x78c   :  { %v1025_v43 = vsel %vm470_vm3, %v3856_v41, 0.0 }
 0x78d   :  { %1026 = vadd.xlane.f32.xlu0 %v1025_v43  ;;  %v1438_v43 = vld [vmem:[%s4551_s3 + $0xd8] sm:$0xff] }
 0x812   :  { %v1024_v45 = vpop.xlane.xlu1 %1023 }
 0x813   :  { %3857 = vrcp.f32 %v1024_v45  ;;  %v1436_v45 = vld [vmem:[%s4551_s3 + $0xc8] sm:$0xff] }
 0x816   :  { %v1027_v46 = vpop.xlane.xlu0 %1026 }
 0x817   :  { %3859 = vrcp.f32 %v1027_v46  ;;  %v1435_v46 = vld [vmem:[%s4551_s3 + $0xc0] sm:$0xff] }
 0x820   :  { %v3858_v47 = vpop.eup %3857 }
 0x821   :  { %v1030_v48 = vmul.f32 %v3858_v47, %v3854_v39  ;;  %v1441_v39 = vld [vmem:[%s4551_s3 + $0xf0] sm:$0xff]  ;;  %v1434_v47 = vld [vmem:[%s4551_s3 + $0xb8] sm:$0xff] }
 0x823   :  { %3626 = vmatprep.mubr.msk.f32.mxu1 %vm470_vm3, %v1030_v48  ;;  %v3260_v48 = vld [vmem:[%s4554_s5 + $0x20] ss:$0 sm:$0xff] }
 0x824   :  { %v3860_v49 = vpop.eup %3859 }
 0x825   :  { %v1031_v50 = vmul.f32 %v3860_v49, %v3856_v41  ;;  %v1439_v41 = vld [vmem:[%s4551_s3 + $0xe0] sm:$0xff] }
 0x827   :  { %3627 = vmatmul.mubr.msk.f32.vlgmr.msra.gmra.mxu1 %vm470_vm3, %v1031_v50 }
 0x828   :  { %3637 = vmatpush3.msra.mxu1 %v666_v44  ;;  %3640 = vmatprep.mubr.msk.f32.mxu1 %vm470_vm3, %v656_v10  ;;  %v1437_v44 = vld [vmem:[%s4551_s3 + $0xd0] sm:$0xff] }
 0x829   :  { %3638 = vmatprep.subr.mxu1 %v665_v51 }
 0x82a   :  { %3639 = vmatpush3.msra.mxu1 %v665_v51 }
 0x82b   :  { %3641 = vmatmul.mubr.msk.f32.vlgmr.msra.gmra.mxu1 %vm470_vm3, %v3581_v9  ;;  %3654 = vmatprep.subr.mxu1 %v1441_v39 }
 0x82c   :  { %3655 = vmatpush3.msra.mxu1 %v1441_v39 }
 0x82d   :  { %3656 = vmatprep.subr.mxu1 %v1440_v19 }
 0x82e   :  { %3657 = vmatpush3.msra.mxu1 %v1440_v19 }
 0x82f   :  { %3658 = vmatprep.subr.mxu1 %v1439_v41 }
 0x830   :  { %3659 = vmatpush3.msra.mxu1 %v1439_v41 }
 0x831   :  { %3660 = vmatprep.subr.mxu1 %v1438_v43 }
 0x832   :  { %3661 = vmatpush3.msra.mxu1 %v1438_v43 }
 0x833   :  { %3662 = vmatprep.subr.mxu1 %v1437_v44 }
 0x834   :  { %3663 = vmatpush3.msra.mxu1 %v1437_v44 }
 0x835   :  { %3664 = vmatprep.subr.mxu1 %v1436_v45 }
 0x836   :  { %3665 = vmatpush3.msra.mxu1 %v1436_v45 }
 0x837   :  { %3666 = vmatprep.subr.mxu1 %v1435_v46 }
 0x838   :  { %3667 = vmatpush3.msra.mxu1 %v1435_v46 }
 0x839   :  { %3668 = vmatprep.subr.mxu1 %v1434_v47 }
 0x83a   :  { %3669 = vmatpush3.msra.mxu1 %v1434_v47  ;;  %v3266_v47 = vld [vmem:[%s4551_s3 + $0xfc] ss:$0 sm:$0xff] }
 0x8e7   :  { %v3628_v54 = vpop.f32.mrf.mxu1 }
 0x8e9   :  { %v1104_v55 = vpop.f32.mrf.mxu1 }
 0x8ea   :  { %3633 = vmatprep.mubr.msk.f32.mxu0 %vm470_vm3, %v1104_v55 }
 0x8eb   :  { %3634 = vmatmul.mubr.msk.f32.vlgmr.msra.gmra.mxu0 %vm470_vm3, %v3628_v54  ;;  %v3642_v56 = vpop.f32.mrf.mxu1 }
 0x8ed   :  { %v1268_v60 = vpop.f32.mrf.mxu1 }
 0x9ab   :  { %v3635_v57 = vpop.f32.mrf.mxu0 }
 0x9ac   :  { %v1274_v59 = vadd.f32 %v3642_v56, %v3635_v57 }
 0x9ad   :  { %v1187_v61 = vpop.f32.mrf.mxu0 }
 0x9ae   :  { %v1283_v62 = vadd.f32 %v3257_v58, %v1274_v59  ;;  %v1269_v0 = vadd.f32 %v1268_v60, %v1187_v61 }
 0x9b0   :  { %v1282_v1 = vadd.f32 %v3257_v58, %v1269_v0  ;;  %v1285_v3 = vadd.f32 %v1283_v62, %v4054_v2 }
 0x9b2   :  { %v1291_v4 = vsel %vm134_vm2, %v1285_v3, 0.0  ;;  %v1284_v5 = vadd.f32 %v1282_v1, %v4048_v63  ;;  %v1329_v63 = vld [vmem:[%s4554_s5 + $0x18] sm:$0xff] }
 0x9b3   :  { %1292 = vadd.xlane.f32.xlu0 %v1291_v4  ;;  %3643 = vmatprep.subr.mxu0 %v1329_v63 }
 0x9b4   :  { %v1288_v6 = vsel %vm134_vm2, %v1284_v5, 0.0  ;;  %3644 = vmatpush3.msra.mxu0 %v1329_v63 }
 0x9b5   :  { %1289 = vadd.xlane.f32.xlu1 %v1288_v6  ;;  %3645 = vmatprep.subr.mxu0 %v1328_v16 }
 0x9b6   :  { %3646 = vmatpush3.msra.mxu0 %v1328_v16 }
 0x9b7   :  { %3647 = vmatprep.subr.mxu0 %v1327_v17 }
 0x9b8   :  { %3648 = vmatpush3.msra.mxu0 %v1327_v17 }
 0x9b9   :  { %3649 = vmatprep.subr.mxu0 %v1326_v18 }
 0x9ba   :  { %3650 = vmatpush3.msra.mxu0 %v1326_v18 }
 0xa3c   :  { %v1293_v7 = vpop.xlane.xlu0 %1292 }
 0xa3d   :  { %v1295_v8 = vmul.f32 0.03125, %v1293_v7 }
 0xa3e   :  { %v1290_v9 = vpop.xlane.xlu1 %1289 }
 0xa3f   :  { %v1297_v10 = vsub.f32 %v1285_v3, %v1295_v8  ;;  %v1294_v11 = vmul.f32 0.03125, %v1290_v9  ;;  %v3263_v9 = vld [vmem:[%s4551_s3 + $0xfb] ss:$0 sm:$0xff] }
 0xa41   :  { %v1296_v12 = vsub.f32 %v1284_v5, %v1294_v11  ;;  %v1299_v13 = vmul.f32 %v1297_v10, %v1297_v10 }
 0xa43   :  { %v1303_v14 = vsel %vm134_vm2, %v1299_v13, 0.0  ;;  %v1298_v15 = vmul.f32 %v1296_v12, %v1296_v12 }
 0xa44   :  { %1304 = vadd.xlane.f32.xlu0 %v1303_v14 }
 0xa45   :  { %v1300_v2 = vsel %vm134_vm2, %v1298_v15, 0.0 }
 0xa46   :  { %1301 = vadd.xlane.f32.xlu1 %v1300_v2 }
 0xacd   :  { %v1305_v21 = vpop.xlane.xlu0 %1304 }
 0xace   :  { %v1307_v22 = vmul.f32 0.03125, %v1305_v21 }
 0xacf   :  { %v1302_v23 = vpop.xlane.xlu1 %1301 }
 0xad0   :  { %v1309_v24 = vadd.f32 1e-12, %v1307_v22  ;;  %v1306_v25 = vmul.f32 0.03125, %v1302_v23 }
 0xad2   :  { %3861 = vrsqrt.f32 %v1309_v24  ;;  %v1308_v26 = vadd.f32 1e-12, %v1306_v25 }
 0xad4   :  { %3863 = vrsqrt.f32 %v1308_v26 }
 0xadf   :  { %v3862_v27 = vpop.eup %3861 }
 0xae0   :  { %v1313_v29 = vmul.f32 %v3862_v27, %v1297_v10 }
 0xae1   :  { %v3864_v30 = vpop.eup %3863 }
 0xae2   :  { %v1312_v31 = vmul.f32 %v3864_v30, %v1296_v12  ;;  %v1319_v32 = vmul.f32 %v3258_v28, %v1313_v29  ;;  %v1748_v29 = vld [vmem:[%s4552_s4 + $0x158] sm:$0xff]  ;;  %v1573_v30 = vld [vmem:[%s4552_s4 + $0xd0] sm:$0xff] }
 0xae3   :  { %3695 = vmatprep.subr.mxu1 %v1748_v29 }
 0xae4   :  { %v1318_v35 = vmul.f32 %v3258_v28, %v1312_v31  ;;  %v1325_v38 = vadd.f32 %v3259_v34, %v1319_v32  ;;  %v1574_v28 = vld [vmem:[%s4552_s4 + $0xd8] sm:$0xff]  ;;  %v1747_v31 = vld [vmem:[%s4552_s4 + $0x150] sm:$0xff]  ;;  %v1572_v32 = vld [vmem:[%s4552_s4 + $0xc8] sm:$0xff] }
 0xae5   :  { %3673 = vmatprep.subr.mxu0 %v1574_v28 }
 0xae6   :  { %v4226_v37 = vadd.f32 %v3259_v34, %v1318_v35  ;;  %v1746_v34 = vld [vmem:[%s4552_s4 + $0x148] sm:$0xff]  ;;  %v1571_v35 = vld [vmem:[%s4552_s4 + $0xc0] sm:$0xff] }
 0xae8   :  { %3651 = vmatprep.mubr.msk.f32.mxu0 %vm134_vm2, %v4226_v37 }
 0xae9   :  { %3652 = vmatmul.mubr.msk.f32.vlgmr.msra.gmra.mxu0 %vm134_vm2, %v1325_v38 }
 0xaea   :  { %3674 = vmatpush3.msra.mxu0 %v1574_v28 }
 0xaeb   :  { %3675 = vmatprep.subr.mxu0 %v1573_v30 }
 0xaec   :  { %3676 = vmatpush3.msra.mxu0 %v1573_v30 }
 0xaed   :  { %3677 = vmatprep.subr.mxu0 %v1572_v32 }
 0xaee   :  { %3678 = vmatpush3.msra.mxu0 %v1572_v32 }
 0xaef   :  { %3679 = vmatprep.subr.mxu0 %v1571_v35 }
 0xaf0   :  { %3680 = vmatpush3.msra.mxu0 %v1571_v35 }
 0xba9   :  { %v3653_v49 = vpop.f32.mrf.mxu0 }
 0xbaa   :  { %v1413_v50 = vadd.f32 %v3653_v49, %v3260_v48 }
 0xbab   :  { %v1407_v51 = vpop.f32.mrf.mxu0 }
 0xbac   :  { %v1417_v52 = vmul.f32 %v1413_v50, %v1413_v50  ;;  %v1408_v53 = vadd.f32 %v3260_v48, %v1407_v51 }
 0xbae   :  { %v1419_v54 = vmul.f32 %v1417_v52, %v1413_v50  ;;  %v1416_v55 = vmul.f32 %v1408_v53, %v1408_v53  ;;  %v3267_v52 = vld [vmem:[%s4551_s3 + $0xfd] ss:$0 sm:$0xff] }
 0xbb0   :  { %v1421_v56 = vmul.f32 0.044715, %v1419_v54  ;;  %v1418_v57 = vmul.f32 %v1416_v55, %v1408_v53 }
 0xbb2   :  { %v1423_v58 = vadd.f32 %v1421_v56, %v1413_v50  ;;  %v1420_v59 = vmul.f32 0.044715, %v1418_v57  ;;  %v1663_v56 = vld [vmem:[%s4552_s4 + $0x110] sm:$0xff]  ;;  %v1662_v57 = vld [vmem:[%s4552_s4 + $0x108] sm:$0xff] }
 0xbb4   :  { %v1425_v60 = vmul.f32 0.7978846, %v1423_v58  ;;  %v1422_v61 = vadd.f32 %v1420_v59, %v1408_v53  ;;  %v1661_v58 = vld [vmem:[%s4552_s4 + $0x100] sm:$0xff]  ;;  %v3274_v59 = vld [vmem:[%s4552_s4 + $0x18a] ss:$0 sm:$0xff] }
 0xbb6   :  { %3865 = vtanh.f32 %v1425_v60  ;;  %v1424_v62 = vmul.f32 0.7978846, %v1422_v61 }
 0xbb8   :  { %3867 = vtanh.f32 %v1424_v62 }
 0xbc3   :  { %v3866_v0 = vpop.eup %3865 }
 0xbc4   :  { %v1429_v1 = vadd.f32 1.0, %v3866_v0  ;;  %v3268_v0 = vld [vmem:[%s4552_s4 + $0x186] ss:$0 sm:$0xff] }
 0xbc5   :  { %v3868_v3 = vpop.eup %3867 }
 0xbc6   :  { %v1428_v4 = vadd.f32 1.0, %v3868_v3  ;;  %v1431_v5 = vmul.f32 0.5, %v1429_v1 }
 0xbc8   :  { %v1430_v6 = vmul.f32 0.5, %v1428_v4  ;;  %v1433_v8 = vmul.f32 %v1431_v5, %v1413_v50 }
 0xbca   :  { %v1432_v7 = vmul.f32 %v1430_v6, %v1408_v53  ;;  %v3271_v6 = vld [vmem:[%s4552_s4 + $0x188] ss:$0 sm:$0xff] }
 0xbcc   :  { %3670 = vmatprep.mubr.msk.f32.mxu1 %vm1447_vm8, %v1432_v7 }
 0xbcd   :  { %3671 = vmatmul.mubr.msk.f32.vlgmr.msra.gmra.mxu1 %vm1447_vm8, %v1433_v8 }
 0xbce   :  { %3696 = vmatpush3.msra.mxu1 %v1748_v29 }
 0xbcf   :  { %3697 = vmatprep.subr.mxu1 %v1747_v31 }
 0xbd0   :  { %3698 = vmatpush3.msra.mxu1 %v1747_v31 }
 0xbd1   :  { %3699 = vmatprep.subr.mxu1 %v1746_v34 }
 0xbd2   :  { %3700 = vmatpush3.msra.mxu1 %v1746_v34 }
 0xc8d   :  { %v3672_v10 = vpop.f32.mrf.mxu1 }
 0xc8e   :  { %v1526_v11 = vadd.f32 %v3672_v10, %v3263_v9 }
 0xc8f   :  { %v1520_v12 = vpop.f32.mrf.mxu1 }
 0xc90   :  { %v1521_v13 = vadd.f32 %v3263_v9, %v1520_v12  ;;  %v1530_v14 = vadd.f32 %v1526_v11, %v1325_v38  ;;  %v1664_v38 = vld [vmem:[%s4552_s4 + $0x118] sm:$0xff] }
 0xc91   :  { %3684 = vmatprep.subr.mxu0 %v1664_v38  ;;  %v2112_v11 = vld [vmem:[%s4552_s4 + $0x138] sm:$0xff] }
 0xc92   :  { %v1536_v15 = vsel %vm134_vm2, %v1530_v14, 0.0  ;;  %v1529_v2 = vadd.f32 %v1521_v13, %v4226_v37  ;;  %v1745_v37 = vld [vmem:[%s4552_s4 + $0x140] sm:$0xff]  ;;  %v2111_v13 = vld [vmem:[%s4552_s4 + $0x130] sm:$0xff] }
 0xc93   :  { %1537 = vadd.xlane.f32.xlu0 %v1536_v15  ;;  %3701 = vmatprep.subr.mxu1 %v1745_v37  ;;  %v2109_v15 = vld [vmem:[%s4552_s4 + $0x120] sm:$0xff] }
 0xc94   :  { %v1533_v63 = vsel %vm134_vm2, %v1529_v2, 0.0  ;;  %3702 = vmatpush3.msra.mxu1 %v1745_v37 }
 0xc95   :  { %1534 = vadd.xlane.f32.xlu1 %v1533_v63 }
 0xd1c   :  { %v1538_v16 = vpop.xlane.xlu0 %1537 }
 0xd1d   :  { %v1540_v17 = vmul.f32 0.03125, %v1538_v16 }
 0xd1e   :  { %v1535_v18 = vpop.xlane.xlu1 %1534 }
 0xd1f   :  { %v1542_v21 = vsub.f32 %v1530_v14, %v1540_v17  ;;  %v1539_v22 = vmul.f32 0.03125, %v1535_v18  ;;  %v2110_v14 = vld [vmem:[%s4552_s4 + $0x128] sm:$0xff] }
 0xd21   :  { %v1541_v23 = vsub.f32 %v1529_v2, %v1539_v22  ;;  %v1544_v24 = vmul.f32 %v1542_v21, %v1542_v21 }
 0xd23   :  { %v1548_v25 = vsel %vm134_vm2, %v1544_v24, 0.0  ;;  %v1543_v26 = vmul.f32 %v1541_v23, %v1541_v23 }
 0xd24   :  { %1549 = vadd.xlane.f32.xlu0 %v1548_v25 }
 0xd25   :  { %v1545_v27 = vsel %vm134_vm2, %v1543_v26, 0.0 }
 0xd26   :  { %1546 = vadd.xlane.f32.xlu1 %v1545_v27 }
 0xdad   :  { %v1550_v39 = vpop.xlane.xlu0 %1549 }
 0xdae   :  { %v1552_v19 = vmul.f32 0.03125, %v1550_v39 }
 0xdaf   :  { %v1547_v41 = vpop.xlane.xlu1 %1546 }
 0xdb0   :  { %v1554_v43 = vadd.f32 1e-12, %v1552_v19  ;;  %v1551_v44 = vmul.f32 0.03125, %v1547_v41  ;;  %v2028_v41 = vld [vmem:[%s4552_s4 + $0xf8] sm:$0xff] }
 0xdb2   :  { %3869 = vrsqrt.f32 %v1554_v43  ;;  %v1553_v45 = vadd.f32 1e-12, %v1551_v44 }
 0xdb4   :  { %3871 = vrsqrt.f32 %v1553_v45 }
 0xdbf   :  { %v3870_v46 = vpop.eup %3869 }
 0xdc0   :  { %v1558_v48 = vmul.f32 %v3870_v46, %v1542_v21 }
 0xdc1   :  { %v3872_v49 = vpop.eup %3871 }
 0xdc2   :  { %v1557_v50 = vmul.f32 %v3872_v49, %v1541_v23  ;;  %v1564_v51 = vmul.f32 %v3266_v47, %v1558_v48  ;;  %v3286_v23 = vld [vmem:[%s4552_s4 + $0x189] ss:$0 sm:$0xff]  ;;  %v2027_v49 = vld [vmem:[%s4552_s4 + $0xf0] sm:$0xff] }
 0xdc4   :  { %v1563_v53 = vmul.f32 %v3266_v47, %v1557_v50  ;;  %v4303_v55 = vadd.f32 %v3267_v52, %v1564_v51  ;;  %v2026_v50 = vld [vmem:[%s4552_s4 + $0xe8] sm:$0xff]  ;;  %v2025_v51 = vld [vmem:[%s4552_s4 + $0xe0] sm:$0xff] }
 0xdc6   :  { %v4301_v54 = vadd.f32 %v3267_v52, %v1563_v53  ;;  %v2196_v52 = vld [vmem:[%s4552_s4 + $0x178] sm:$0xff]  ;;  %v2195_v53 = vld [vmem:[%s4552_s4 + $0x170] sm:$0xff] }
 0xdc8   :  { %3681 = vmatprep.mubr.msk.f32.mxu0 %vm134_vm2, %v4301_v54  ;;  %3703 = vmatprep.mubr.msk.f32.mxu1 %vm134_vm2, %v4301_v54 }
 0xdc9   :  { %3682 = vmatmul.mubr.msk.f32.vlgmr.msra.gmra.mxu0 %vm134_vm2, %v4303_v55  ;;  %3704 = vmatmul.mubr.msk.f32.vlgmr.msra.gmra.mxu1 %vm134_vm2, %v4303_v55 }
 0xdca   :  { %3685 = vmatpush3.msra.mxu0 %v1664_v38  ;;  %3692 = vmatprep.mubr.msk.f32.mxu0 %vm134_vm2, %v4301_v54 }
 0xdcb   :  { %3686 = vmatprep.subr.mxu0 %v1663_v56 }
 0xdcc   :  { %3687 = vmatpush3.msra.mxu0 %v1663_v56  ;;  %v2194_v56 = vld [vmem:[%s4552_s4 + $0x168] sm:$0xff] }
 0xdcd   :  { %3688 = vmatprep.subr.mxu0 %v1662_v57 }
 0xdce   :  { %3689 = vmatpush3.msra.mxu0 %v1662_v57  ;;  %v2193_v57 = vld [vmem:[%s4552_s4 + $0x160] sm:$0xff] }
 0xdcf   :  { %3690 = vmatprep.subr.mxu0 %v1661_v58 }
 0xdd0   :  { %3691 = vmatpush3.msra.mxu0 %v1661_v58 }
 0xdd1   :  { %3693 = vmatmul.mubr.msk.f32.vlgmr.msra.gmra.mxu0 %vm134_vm2, %v4303_v55 }
 0xe89   :  { %v3683_v60 = vpop.f32.mrf.mxu0  ;;  %v3705_v61 = vpop.f32.mrf.mxu1 }
 0xe8a   :  { %v1826_v62 = vadd.f32 %v3705_v61, %v3274_v59  ;;  %v1658_v12 = vadd.f32 %v3683_v60, %v3268_v0  ;;  %v3283_v61 = vld [vmem:[%s4552_s4 + $0x187] ss:$0 sm:$0xff] }
 0xe8b   :  { %v1652_v1 = vpop.f32.mrf.mxu0  ;;  %v1820_v3 = vpop.f32.mrf.mxu1 }
 0xe8c   :  { %v1653_v4 = vadd.f32 %v3268_v0, %v1652_v1  ;;  %v1821_v5 = vadd.f32 %v3274_v59, %v1820_v3  ;;  %3713 = vmatprep.subr.mxu1 %v1826_v62  ;;  %v3289_v3 = vld [vmem:[%s4552_s4 + $0x18b] ss:$0 sm:$0xff] }
 0xe8d   :  { %3714 = vmatpush3.msra.mxu1 %v1826_v62 }
 0xe8e   :  { %3710 = vmatprep.mubr.msk.f32.mxu0 %vm470_vm3, %v1653_v4  ;;  %3715 = vmatprep.subr.mxu1 %v1821_v5 }
 0xe8f   :  { %3716 = vmatpush3.msra.mxu1 %v1821_v5 }
 0xe90   :  { %3720 = vmatprep.subr.mxu1 %v2028_v41 }
 0xe91   :  { %v3694_v7 = vpop.f32.mrf.mxu0 }
 0xe92   :  { %v1742_v8 = vadd.f32 %v3694_v7, %v3271_v6 }
 0xe93   :  { %v1736_v9 = vpop.f32.mrf.mxu0 }
 0xe94   :  { %v1737_v10 = vadd.f32 %v3271_v6, %v1736_v9  ;;  %3706 = vmatprep.subr.msk.mxu0 %vm470_vm3, %v1742_v8 }
 0xe95   :  { %3707 = vmatpush3.xpose.msk.msra.mxu0 %vm470_vm3, %v1742_v8 }
 0xe96   :  { %3708 = vmatprep.subr.msk.mxu0 %vm470_vm3, %v1737_v10 }
 0xe99   :  { %3709 = vmatpush3.xpose.msk.msra.mxu0 %vm470_vm3, %v1737_v10 }
 0xe9a   :  { %3731 = vmatprep.subr.mxu0 %v2112_v11 }
 0xe9c   :  { %3711 = vmatmul.mubr.msk.f32.vlgmr.msra.gmra.mxu0 %vm470_vm3, %v1658_v12 }
 0xe9d   :  { %3732 = vmatpush3.msra.mxu0 %v2112_v11  ;;  %3739 = vmatprep.mubr.msk.f32.mxu0 %vm134_vm2, %v4301_v54 }
 0xe9e   :  { %3733 = vmatprep.subr.mxu0 %v2111_v13 }
 0xe9f   :  { %3734 = vmatpush3.msra.mxu0 %v2111_v13 }
 0xea0   :  { %3735 = vmatprep.subr.mxu0 %v2110_v14 }
 0xea1   :  { %3736 = vmatpush3.msra.mxu0 %v2110_v14 }
 0xea2   :  { %3737 = vmatprep.subr.mxu0 %v2109_v15 }
 0xea3   :  { %3738 = vmatpush3.msra.mxu0 %v2109_v15 }
 0xea4   :  { %3740 = vmatmul.mubr.msk.f32.vlgmr.msra.gmra.mxu0 %vm134_vm2, %v4303_v55 }
 0xf5c   :  { %v3712_v2 = vpop.f32.mrf.mxu0 }
 0xf5d   :  { %v1917_v63 = vmul.f32 0.25, %v3712_v2 }
 0xf5e   :  { %v1907_v16 = vpop.f32.mrf.mxu0 }
 0xf5f   :  { %v1916_v17 = vmul.f32 0.25, %v1907_v16  ;;  %v1919_v18 = vadd.f32 %v1917_v63, %v4125_v42 }
 0xf61   :  { %v1923_v21 = vsel %vm470_vm3, %v1919_v18, -inf  ;;  %v1918_v22 = vadd.f32 %v1916_v17, %v4123_v40 }
 0xf62   :  { %1924 = vmax.xlane.f32.xlu0 %v1923_v21 }
 0xf63   :  { %v1920_v24 = vsel %vm470_vm3, %v1918_v22, -inf }
 0xf64   :  { %v3741_v25 = vpop.f32.mrf.mxu0  ;;  %1921 = vmax.xlane.f32.xlu1 %v1920_v24 }
 0xf65   :  { %v2190_v26 = vadd.f32 %v3741_v25, %v3286_v23 }
 0xf66   :  { %v2184_v27 = vpop.f32.mrf.mxu0 }
 0xf67   :  { %v2185_v28 = vadd.f32 %v3286_v23, %v2184_v27  ;;  %3753 = vmatprep.subr.msk.mxu0 %vm470_vm3, %v2190_v26 }
 0xf68   :  { %3754 = vmatpush3.xpose.msk.msra.mxu0 %vm470_vm3, %v2190_v26 }
 0xf69   :  { %3755 = vmatprep.subr.msk.mxu0 %vm470_vm3, %v2185_v28 }
 0xf6c   :  { %3756 = vmatpush3.xpose.msk.msra.mxu0 %vm470_vm3, %v2185_v28 }
 0xfeb   :  { %v1925_v29 = vpop.xlane.xlu0 %1924 }
 0xfec   :  { %v1927_v30 = vsub.f32 %v1919_v18, %v1925_v29 }
 0xfed   :  { %v1922_v31 = vpop.xlane.xlu1 %1921 }
 0xfee   :  { %v1930_v32 = vmul.f32 1.442695, %v1927_v30  ;;  %v1926_v34 = vsub.f32 %v1918_v22, %v1922_v31  ;;  %v2023_v31 = vld [vmem:[%s4551_s3 + $0x100] sm:$0xff] }
 0xff0   :  { %3873 = vpow2.f32 %v1930_v32  ;;  %v1928_v35 = vmul.f32 1.442695, %v1926_v34  ;;  %v2472_v32 = vld [vmem:[%s4551_s3 + $0x118] sm:$0xff]  ;;  %v2471_v34 = vld [vmem:[%s4551_s3 + $0x110] sm:$0xff] }
 0xff1   :  { %3767 = vmatprep.subr.mxu0 %v2472_v32 }
 0xff2   :  { %3875 = vpow2.f32 %v1928_v35 }
 0xffd   :  { %v3874_v37 = vpop.eup %3873 }
 0xffe   :  { %v1935_v38 = vsel %vm470_vm3, %v3874_v37, 0.0 }
 0xfff   :  { %v3876_v39 = vpop.eup %3875  ;;  %1936 = vadd.xlane.f32.xlu0 %v1935_v38 }
0x1000   :  { %v1932_v19 = vsel %vm470_vm3, %v3876_v39, 0.0 }
0x1001   :  { %1933 = vadd.xlane.f32.xlu1 %v1932_v19  ;;  %v3302_v19 = vld [vmem:[%s4551_s3 + $0x160] ss:$0 sm:$0xff] }
0x1088   :  { %v1937_v43 = vpop.xlane.xlu0 %1936 }
0x1089   :  { %3877 = vrcp.f32 %v1937_v43 }
0x108a   :  { %v1934_v44 = vpop.xlane.xlu1 %1933 }
0x108b   :  { %3879 = vrcp.f32 %v1934_v44 }
0x1096   :  { %v3878_v45 = vpop.eup %3877 }
0x1097   :  { %v1941_v48 = vmul.f32 %v3878_v45, %v3874_v37 }
0x1098   :  { %v3880_v46 = vpop.eup %3879 }
0x1099   :  { %v1940_v47 = vmul.f32 %v3880_v46, %v3876_v39 }
0x109b   :  { %3717 = vmatprep.mubr.msk.f32.mxu1 %vm470_vm3, %v1940_v47 }
0x109c   :  { %3718 = vmatmul.mubr.msk.f32.vlgmr.msra.gmra.mxu1 %vm470_vm3, %v1941_v48 }
0x109d   :  { %3721 = vmatpush3.msra.mxu1 %v2028_v41  ;;  %3728 = vmatprep.mubr.msk.f32.mxu1 %vm134_vm2, %v4301_v54 }
0x109e   :  { %3722 = vmatprep.subr.mxu1 %v2027_v49 }
0x109f   :  { %3723 = vmatpush3.msra.mxu1 %v2027_v49 }
0x10a0   :  { %3724 = vmatprep.subr.mxu1 %v2026_v50 }
0x10a1   :  { %3725 = vmatpush3.msra.mxu1 %v2026_v50 }
0x10a2   :  { %3726 = vmatprep.subr.mxu1 %v2025_v51 }
0x10a3   :  { %3727 = vmatpush3.msra.mxu1 %v2025_v51 }
0x10a4   :  { %3729 = vmatmul.mubr.msk.f32.vlgmr.msra.gmra.mxu1 %vm134_vm2, %v4303_v55  ;;  %3742 = vmatprep.subr.mxu1 %v2196_v52 }
0x10a5   :  { %3743 = vmatpush3.msra.mxu1 %v2196_v52  ;;  %3750 = vmatprep.mubr.msk.f32.mxu1 %vm134_vm2, %v4301_v54 }
0x10a6   :  { %3744 = vmatprep.subr.mxu1 %v2195_v53 }
0x10a7   :  { %3745 = vmatpush3.msra.mxu1 %v2195_v53 }
0x10a8   :  { %3746 = vmatprep.subr.mxu1 %v2194_v56 }
0x10a9   :  { %3747 = vmatpush3.msra.mxu1 %v2194_v56 }
0x10aa   :  { %3748 = vmatprep.subr.mxu1 %v2193_v57 }
0x10ab   :  { %3749 = vmatpush3.msra.mxu1 %v2193_v57 }
0x10ac   :  { %3751 = vmatmul.mubr.msk.f32.vlgmr.msra.gmra.mxu1 %vm134_vm2, %v4303_v55 }
0x115c   :  { %v3719_v58 = vpop.f32.mrf.mxu1 }
0x115e   :  { %v2014_v59 = vpop.f32.mrf.mxu1 }
0x1164   :  { %v3730_v60 = vpop.f32.mrf.mxu1 }
0x1165   :  { %v2106_v1 = vadd.f32 %v3730_v60, %v3283_v61 }
0x1166   :  { %v2100_v62 = vpop.f32.mrf.mxu1 }
0x1167   :  { %v2101_v0 = vadd.f32 %v3283_v61, %v2100_v62 }
0x1169   :  { %3757 = vmatprep.mubr.msk.f32.mxu0 %vm470_vm3, %v2101_v0  ;;  %v2686_v0 = vld [vmem:[%s4554_s5 + $0x38] sm:$0xff] }
0x116a   :  { %3758 = vmatmul.mubr.msk.f32.vlgmr.msra.gmra.mxu0 %vm470_vm3, %v2106_v1  ;;  %v2685_v1 = vld [vmem:[%s4554_s5 + $0x30] sm:$0xff] }
0x116b   :  { %3768 = vmatpush3.msra.mxu0 %v2472_v32 }
0x116c   :  { %v3752_v4 = vpop.f32.mrf.mxu1  ;;  %3769 = vmatprep.subr.mxu0 %v2471_v34 }
0x116d   :  { %v2274_v5 = vadd.f32 %v3752_v4, %v3289_v3  ;;  %3770 = vmatpush3.msra.mxu0 %v2471_v34 }
0x116e   :  { %v2268_v6 = vpop.f32.mrf.mxu1 }
0x116f   :  { %v2269_v7 = vadd.f32 %v3289_v3, %v2268_v6  ;;  %3760 = vmatprep.subr.mxu1 %v2274_v5  ;;  %v2684_v3 = vld [vmem:[%s4554_s5 + $0x28] sm:$0xff] }
0x1170   :  { %3761 = vmatpush3.msra.mxu1 %v2274_v5 }
0x1171   :  { %3762 = vmatprep.subr.mxu1 %v2269_v7 }
0x1172   :  { %3763 = vmatpush3.msra.mxu1 %v2269_v7 }
0x122a   :  { %v3759_v8 = vpop.f32.mrf.mxu0 }
0x122b   :  { %v2365_v9 = vmul.f32 0.25, %v3759_v8 }
0x122c   :  { %v2355_v10 = vpop.f32.mrf.mxu0 }
0x122d   :  { %v2364_v11 = vmul.f32 0.25, %v2355_v10  ;;  %v2367_v12 = vadd.f32 %v2365_v9, %v4125_v42 }
0x122f   :  { %v2371_v13 = vsel %vm470_vm3, %v2367_v12, -inf  ;;  %v2366_v14 = vadd.f32 %v2364_v11, %v4123_v40  ;;  %v2024_v40 = vld [vmem:[%s4551_s3 + $0x108] sm:$0xff]  ;;  %v3303_v11 = vld [vmem:[%s4551_s3 + $0x161] ss:$0 sm:$0xff] }
0x1230   :  { %2372 = vmax.xlane.f32.xlu0 %v2371_v13  ;;  %3774 = vmatprep.subr.mxu1 %v2024_v40 }
0x1231   :  { %v2368_v15 = vsel %vm470_vm3, %v2366_v14, -inf }
0x1232   :  { %2369 = vmax.xlane.f32.xlu1 %v2368_v15 }
0x12b9   :  { %v2373_v2 = vpop.xlane.xlu0 %2372 }
0x12ba   :  { %v2375_v63 = vsub.f32 %v2367_v12, %v2373_v2  ;;  %v3304_v2 = vld [vmem:[%s4551_s3 + $0x162] ss:$0 sm:$0xff] }
0x12bb   :  { %v2370_v16 = vpop.xlane.xlu1 %2369 }
0x12bc   :  { %v2378_v17 = vmul.f32 1.442695, %v2375_v63  ;;  %v2374_v18 = vsub.f32 %v2366_v14, %v2370_v16 }
0x12be   :  { %3881 = vpow2.f32 %v2378_v17  ;;  %v2376_v21 = vmul.f32 1.442695, %v2374_v18  ;;  %v2799_v18 = vld [vmem:[%s4551_s3 + $0x158] sm:$0xff] }
0x12c0   :  { %3883 = vpow2.f32 %v2376_v21  ;;  %v2798_v21 = vld [vmem:[%s4551_s3 + $0x150] sm:$0xff] }
0x12cb   :  { %v3882_v22 = vpop.eup %3881 }
0x12cc   :  { %v2383_v23 = vsel %vm470_vm3, %v3882_v22, 0.0 }
0x12cd   :  { %v3884_v42 = vpop.eup %3883  ;;  %2384 = vadd.xlane.f32.xlu0 %v2383_v23  ;;  %v2796_v23 = vld [vmem:[%s4551_s3 + $0x140] sm:$0xff] }
0x12ce   :  { %v2380_v24 = vsel %vm470_vm3, %v3884_v42, 0.0 }
0x12cf   :  { %2381 = vadd.xlane.f32.xlu1 %v2380_v24  ;;  %v2794_v24 = vld [vmem:[%s4551_s3 + $0x130] sm:$0xff] }
0x1356   :  { %v2385_v25 = vpop.xlane.xlu0 %2384 }
0x1357   :  { %3885 = vrcp.f32 %v2385_v25  ;;  %v2792_v25 = vld [vmem:[%s4551_s3 + $0x120] sm:$0xff] }
0x1358   :  { %v2382_v26 = vpop.xlane.xlu1 %2381 }
0x1359   :  { %3887 = vrcp.f32 %v2382_v26  ;;  %v3305_v26 = vld [vmem:[%s4554_s5 + $0x48] ss:$0 sm:$0xff] }
0x1364   :  { %v3886_v27 = vpop.eup %3885 }
0x1365   :  { %v2389_v30 = vmul.f32 %v3886_v27, %v3882_v22  ;;  %v2797_v22 = vld [vmem:[%s4551_s3 + $0x148] sm:$0xff] }
0x1366   :  { %v3888_v28 = vpop.eup %3887 }
0x1367   :  { %v2388_v29 = vmul.f32 %v3888_v28, %v3884_v42  ;;  %v2795_v42 = vld [vmem:[%s4551_s3 + $0x138] sm:$0xff] }
0x1369   :  { %3764 = vmatprep.mubr.msk.f32.mxu1 %vm470_vm3, %v2388_v29 }
0x136a   :  { %3765 = vmatmul.mubr.msk.f32.vlgmr.msra.gmra.mxu1 %vm470_vm3, %v2389_v30 }
0x136b   :  { %3775 = vmatpush3.msra.mxu1 %v2024_v40  ;;  %3778 = vmatprep.mubr.msk.f32.mxu1 %vm470_vm3, %v2014_v59  ;;  %v2793_v40 = vld [vmem:[%s4551_s3 + $0x128] sm:$0xff] }
0x136c   :  { %3776 = vmatprep.subr.mxu1 %v2023_v31 }
0x136d   :  { %3777 = vmatpush3.msra.mxu1 %v2023_v31 }
0x136e   :  { %3779 = vmatmul.mubr.msk.f32.vlgmr.msra.gmra.mxu1 %vm470_vm3, %v3719_v58  ;;  %3792 = vmatprep.subr.mxu1 %v2799_v18 }
0x136f   :  { %3793 = vmatpush3.msra.mxu1 %v2799_v18 }
0x1370   :  { %3794 = vmatprep.subr.mxu1 %v2798_v21 }
0x1371   :  { %3795 = vmatpush3.msra.mxu1 %v2798_v21  ;;  %v3312_v21 = vld [vmem:[%s4551_s3 + $0x165] ss:$0 sm:$0xff] }
0x1372   :  { %3796 = vmatprep.subr.mxu1 %v2797_v22 }
0x1373   :  { %3797 = vmatpush3.msra.mxu1 %v2797_v22 }
0x1374   :  { %3798 = vmatprep.subr.mxu1 %v2796_v23 }
0x1375   :  { %3799 = vmatpush3.msra.mxu1 %v2796_v23 }
0x1376   :  { %3800 = vmatprep.subr.mxu1 %v2795_v42 }
0x1377   :  { %3801 = vmatpush3.msra.mxu1 %v2795_v42 }
0x1378   :  { %3802 = vmatprep.subr.mxu1 %v2794_v24 }
0x1379   :  { %3803 = vmatpush3.msra.mxu1 %v2794_v24 }
0x137a   :  { %3804 = vmatprep.subr.mxu1 %v2793_v40 }
0x137b   :  { %3805 = vmatpush3.msra.mxu1 %v2793_v40 }
0x137c   :  { %3806 = vmatprep.subr.mxu1 %v2792_v25 }
0x137d   :  { %3807 = vmatpush3.msra.mxu1 %v2792_v25 }
0x142a   :  { %v3766_v35 = vpop.f32.mrf.mxu1 }
0x142c   :  { %v2462_v37 = vpop.f32.mrf.mxu1 }
0x142d   :  { %3771 = vmatprep.mubr.msk.f32.mxu0 %vm470_vm3, %v2462_v37 }
0x142e   :  { %3772 = vmatmul.mubr.msk.f32.vlgmr.msra.gmra.mxu0 %vm470_vm3, %v3766_v35  ;;  %v3780_v38 = vpop.f32.mrf.mxu1 }
0x1430   :  { %v2626_v43 = vpop.f32.mrf.mxu1 }
0x14ee   :  { %v3773_v39 = vpop.f32.mrf.mxu0 }
0x14ef   :  { %v2632_v41 = vadd.f32 %v3780_v38, %v3773_v39 }
0x14f0   :  { %v2545_v44 = vpop.f32.mrf.mxu0 }
0x14f1   :  { %v2641_v45 = vadd.f32 %v3302_v19, %v2632_v41  ;;  %v2627_v46 = vadd.f32 %v2626_v43, %v2545_v44 }
0x14f3   :  { %v2640_v47 = vadd.f32 %v3302_v19, %v2627_v46  ;;  %v2643_v48 = vadd.f32 %v2641_v45, %v4303_v55 }
0x14f5   :  { %v2649_v49 = vsel %vm134_vm2, %v2643_v48, 0.0  ;;  %v2642_v50 = vadd.f32 %v2640_v47, %v4301_v54  ;;  %v2687_v54 = vld [vmem:[%s4554_s5 + $0x40] sm:$0xff] }
0x14f6   :  { %2650 = vadd.xlane.f32.xlu0 %v2649_v49  ;;  %3781 = vmatprep.subr.mxu0 %v2687_v54 }
0x14f7   :  { %v2646_v51 = vsel %vm134_vm2, %v2642_v50, 0.0  ;;  %3782 = vmatpush3.msra.mxu0 %v2687_v54 }
0x14f8   :  { %2647 = vadd.xlane.f32.xlu1 %v2646_v51  ;;  %3783 = vmatprep.subr.mxu0 %v2686_v0 }
0x14f9   :  { %3784 = vmatpush3.msra.mxu0 %v2686_v0 }
0x14fa   :  { %3785 = vmatprep.subr.mxu0 %v2685_v1 }
0x14fb   :  { %3786 = vmatpush3.msra.mxu0 %v2685_v1 }
0x14fc   :  { %3787 = vmatprep.subr.mxu0 %v2684_v3 }
0x14fd   :  { %3788 = vmatpush3.msra.mxu0 %v2684_v3 }
0x157f   :  { %v2651_v52 = vpop.xlane.xlu0 %2650 }
0x1580   :  { %v2653_v53 = vmul.f32 0.03125, %v2651_v52  ;;  %v3308_v52 = vld [vmem:[%s4551_s3 + $0x163] ss:$0 sm:$0xff] }
0x1581   :  { %v2648_v56 = vpop.xlane.xlu1 %2647 }
0x1582   :  { %v2655_v57 = vsub.f32 %v2643_v48, %v2653_v53  ;;  %v2652_v58 = vmul.f32 0.03125, %v2648_v56 }
0x1584   :  { %v2654_v59 = vsub.f32 %v2642_v50, %v2652_v58  ;;  %v2657_v60 = vmul.f32 %v2655_v57, %v2655_v57 }
0x1586   :  { %v2661_v61 = vsel %vm134_vm2, %v2657_v60, 0.0  ;;  %v2656_v62 = vmul.f32 %v2654_v59, %v2654_v59 }
0x1587   :  { %2662 = vadd.xlane.f32.xlu0 %v2661_v61 }
0x1588   :  { %v2658_v55 = vsel %vm134_vm2, %v2656_v62, 0.0 }
0x1589   :  { %2659 = vadd.xlane.f32.xlu1 %v2658_v55 }
0x1610   :  { %v2663_v4 = vpop.xlane.xlu0 %2662 }
0x1611   :  { %v2665_v5 = vmul.f32 0.03125, %v2663_v4 }
0x1612   :  { %v2660_v6 = vpop.xlane.xlu1 %2659 }
0x1613   :  { %v2667_v7 = vadd.f32 1e-12, %v2665_v5  ;;  %v2664_v8 = vmul.f32 0.03125, %v2660_v6 }
0x1615   :  { %3889 = vrsqrt.f32 %v2667_v7  ;;  %v2666_v9 = vadd.f32 1e-12, %v2664_v8 }
0x1617   :  { %3891 = vrsqrt.f32 %v2666_v9  ;;  %v3909_v9 = vmov 0.0  }
0x1618   :  { %3811 = vmatprep.subr.mxu0 %v3909_v9 }
0x1622   :  { %v3890_v10 = vpop.eup %3889 }
0x1623   :  { %v2671_v12 = vmul.f32 %v3890_v10, %v2655_v57 }
0x1624   :  { %v3892_v13 = vpop.eup %3891 }
0x1625   :  { %v2670_v14 = vmul.f32 %v3892_v13, %v2654_v59  ;;  %v2677_v15 = vmul.f32 %v3303_v11, %v2671_v12 }
0x1627   :  { %v2676_v63 = vmul.f32 %v3303_v11, %v2670_v14  ;;  %v2683_v17 = vadd.f32 %v3304_v2, %v2677_v15 }
0x1629   :  { %v2682_v16 = vadd.f32 %v3304_v2, %v2676_v63  ;;  %v3311_v63 = vld [vmem:[%s4551_s3 + $0x164] ss:$0 sm:$0xff] }
0x162b   :  { %3789 = vmatprep.mubr.msk.f32.mxu0 %vm134_vm2, %v2682_v16 }
0x162c   :  { %3790 = vmatmul.mubr.msk.f32.vlgmr.msra.gmra.mxu0 %vm134_vm2, %v2683_v17 }
0x162d   :  { %3815 = vmatprep.mubr.msk.f32.mxu0 %vm3910_vm9, %v3909_v9 }
0x16ec   :  { %v3791_v27 = vpop.f32.mrf.mxu0 }
0x16ed   :  { %v2771_v28 = vadd.f32 %v3791_v27, %v3305_v26 }
0x16ee   :  { %v2765_v29 = vpop.f32.mrf.mxu0 }
0x16ef   :  { %v2775_v30 = vmul.f32 %v2771_v28, %v2771_v28  ;;  %v2766_v31 = vadd.f32 %v3305_v26, %v2765_v29  ;;  %v3018_v26 = vld [vmem:[%s4555_s2] sm:$0x3] }
0x16f0   :  { %v3019_v27 = vmul.f32 %v3018_v26, %v3018_v26 }
0x16f1   :  { %v2777_v32 = vmul.f32 %v2775_v30, %v2771_v28  ;;  %v2774_v34 = vmul.f32 %v2766_v31, %v2766_v31 }
0x16f3   :  { %v2779_v35 = vmul.f32 0.044715, %v2777_v32  ;;  %v2776_v37 = vmul.f32 %v2774_v34, %v2766_v31  ;;  %v3029_v34 = vld [vmem:[%s4551_s3 + $0x190] sm:$0xff] }
0x16f5   :  { %v2781_v38 = vadd.f32 %v2779_v35, %v2771_v28  ;;  %v2778_v39 = vmul.f32 0.044715, %v2776_v37  ;;  %v3028_v37 = vld [vmem:[%s4551_s3 + $0x188] sm:$0xff] }
0x16f7   :  { %v2783_v19 = vmul.f32 0.7978846, %v2781_v38  ;;  %v2780_v41 = vadd.f32 %v2778_v39, %v2766_v31  ;;  %v3017_v39 = vld [vmem:[%s4551_s3 + $0x180] sm:$0xff] }
0x16f9   :  { %3893 = vtanh.f32 %v2783_v19  ;;  %v2782_v43 = vmul.f32 0.7978846, %v2780_v41  ;;  %v3016_v19 = vld [vmem:[%s4551_s3 + $0x178] sm:$0xff]  ;;  %v3015_v41 = vld [vmem:[%s4551_s3 + $0x170] sm:$0xff] }
0x16fb   :  { %3895 = vtanh.f32 %v2782_v43  ;;  %v3014_v43 = vld [vmem:[%s4551_s3 + $0x168] sm:$0xff] }
0x1706   :  { %v3894_v44 = vpop.eup %3893 }
0x1707   :  { %v2787_v45 = vadd.f32 1.0, %v3894_v44 }
0x1708   :  { %v3896_v46 = vpop.eup %3895 }
0x1709   :  { %v2786_v47 = vadd.f32 1.0, %v3896_v46  ;;  %v2789_v48 = vmul.f32 0.5, %v2787_v45 }
0x170b   :  { %v2788_v49 = vmul.f32 0.5, %v2786_v47  ;;  %v2791_v51 = vmul.f32 %v2789_v48, %v2771_v28  ;;  %v3020_v28 = vmul.f32 %v3019_v27, %v3018_v26 }
0x170d   :  { %v2790_v50 = vmul.f32 %v2788_v49, %v2766_v31  ;;  %v3021_v29 = vmul.f32 0.044715, %v3020_v28 }
0x170f   :  { %3808 = vmatprep.mubr.msk.f32.mxu1 %vm1447_vm8, %v2790_v50 }
0x1710   :  { %3809 = vmatmul.mubr.msk.f32.vlgmr.msra.gmra.mxu1 %vm1447_vm8, %v2791_v51 }
0x17d0   :  { %v3810_v53 = vpop.f32.mrf.mxu1 }
0x17d1   :  { %v2883_v56 = vadd.f32 %v3810_v53, %v3308_v52 }
0x17d2   :  { %v2877_v57 = vpop.f32.mrf.mxu1 }
0x17d3   :  { %v2878_v58 = vadd.f32 %v3308_v52, %v2877_v57  ;;  %v2887_v59 = vadd.f32 %v2883_v56, %v2683_v17 }
0x17d5   :  { %v2893_v60 = vsel %vm134_vm2, %v2887_v59, 0.0  ;;  %v2886_v61 = vadd.f32 %v2878_v58, %v2682_v16  ;;  %v2928_v16 = vmul.u32 8, %v4115_v33 }
0x17d6   :  { %2894 = vadd.xlane.f32.xlu1 %v2893_v60 }
0x17d7   :  { %v2890_v62 = vsel %vm134_vm2, %v2886_v61, 0.0  ;;  %vm2929_vm10 = vcmp.eq.s32.totalorder %v4001_v20, %v2928_v16  ;;  %v3022_v20 = vadd.f32 %v3021_v29, %v3018_v26 }
0x17d8   :  { %2891 = vadd.xlane.f32.xlu0 %v2890_v62  ;;  %v3313_v25 = vsel %vm2929_vm10, 1.0, %v3909_v9  ;;  %v3317_v62 = vld [vmem:[%s4551_s3 + $0x198] ss:$0 sm:$0xff] }
0x17d9   :  { %v3023_v30 = vmul.f32 0.7978846, %v3022_v20 }
0x185f   :  { %v2895_v55 = vpop.xlane.xlu1 %2894 }
0x1860   :  { %v2897_v54 = vmul.f32 0.03125, %v2895_v55 }
0x1861   :  { %v2892_v0 = vpop.xlane.xlu0 %2891 }
0x1862   :  { %v2899_v1 = vsub.f32 %v2887_v59, %v2897_v54  ;;  %v2896_v3 = vmul.f32 0.03125, %v2892_v0  ;;  %v3201_v59 = vld [vmem:[%s4551_s3 + $0x19a] sm:$0x1] }
0x1863   :  { %v3203_v60 = vsel %vm3202_vm11, %v3201_v59, -inf }
0x1864   :  { %v2898_v4 = vsub.f32 %v2886_v61, %v2896_v3  ;;  %v2901_v5 = vmul.f32 %v2899_v1, %v2899_v1 }
0x1866   :  { %v2905_v6 = vsel %vm134_vm2, %v2901_v5, 0.0  ;;  %v2900_v7 = vmul.f32 %v2898_v4, %v2898_v4 }
0x1867   :  { %2906 = vadd.xlane.f32.xlu1 %v2905_v6 }
0x1868   :  { %v2902_v8 = vsel %vm134_vm2, %v2900_v7, 0.0 }
0x1869   :  { %2903 = vadd.xlane.f32.xlu0 %v2902_v8 }
0x186b   :  { %3204 = vmax.xlane.f32.xlu1 %v3203_v60 }
0x18f0   :  { %v2907_v10 = vpop.xlane.xlu1 %2906 }
0x18f1   :  { %v2909_v11 = vmul.f32 0.03125, %v2907_v10  ;;  %v3318_v10 = vld [vmem:[%s4551_s3 + $0x199] ss:$0 sm:$0xff] }
0x18f2   :  { %v2904_v12 = vpop.xlane.xlu0 %2903 }
0x18f3   :  { %v2911_v13 = vadd.f32 1e-12, %v2909_v11  ;;  %v2908_v14 = vmul.f32 0.03125, %v2904_v12 }
0x18f5   :  { %3897 = vrsqrt.f32 %v2911_v13  ;;  %v2910_v15 = vadd.f32 1e-12, %v2908_v14  ;;  %v3205_v14 = vpop.xlane.xlu1 %3204 }
0x18f7   :  { %3899 = vrsqrt.f32 %v2910_v15  ;;  %v3209_v15 = vrot.slane %v3205_v14, %v207_v36 }
0x18f8   :  { %3901 = vtanh.f32 %v3023_v30 }
0x1902   :  { %v3898_v2 = vpop.eup %3897 }
0x1903   :  { %v2915_v17 = vmul.f32 %v3898_v2, %v2899_v1 }
0x1904   :  { %v3900_v18 = vpop.eup %3899 }
0x1905   :  { %v2921_v22 = vmul.f32 %v3311_v63, %v2915_v17  ;;  %v2914_v23 = vmul.f32 %v3900_v18, %v2898_v4  ;;  %v3902_v31 = vpop.eup %3901 }
0x1906   :  { %v3025_v32 = vadd.f32 1.0, %v3902_v31 }
0x1907   :  { %v2927_v42 = vadd.f32 %v3312_v21, %v2921_v22  ;;  %v2920_v24 = vmul.f32 %v3311_v63, %v2914_v23 }
0x1908   :  { %v3026_v35 = vmul.f32 0.5, %v3025_v32 }
0x1909   :  { %3812 = vmatpush3.msra.mxu0 %v2927_v42  ;;  %v2926_v40 = vadd.f32 %v3312_v21, %v2920_v24 }
0x190a   :  { %3813 = vmatprep.subr.mxu0 %v3909_v9  ;;  %v3027_v38 = vmul.f32 %v3026_v35, %v3018_v26 }
0x190b   :  { %3814 = vmatpush3.msra.mxu0 %v2926_v40 }
0x190c   :  { %3816 = vmatmul.mubr.msk.f32.vlgmr.msra.gmra.mxu0 %vm470_vm3, %v3313_v25  ;;  %3818 = vmatprep.subr.mxu0 %v3909_v9 }
0x190d   :  { %3822 = vmatprep.mubr.msk.f32.mxu0 %vm3910_vm9, %v3909_v9  ;;  %3819 = vmatpush3.msra.mxu0 %v3029_v34 }
0x190e   :  { %3820 = vmatprep.subr.mxu0 %v3909_v9 }
0x190f   :  { %3821 = vmatpush3.msra.mxu0 %v3028_v37 }
0x1910   :  { %3823 = vmatmul.mubr.msk.f32.vlgmr.msra.gmra.mxu0 %vm470_vm3, %v3027_v38  ;;  %3825 = vmatprep.subr.mxu0 %v3909_v9 }
0x1911   :  { %3833 = vmatprep.mubr.msk.f32.mxu0 %vm3910_vm9, %v3909_v9  ;;  %3826 = vmatpush3.msra.mxu0 %v3017_v39 }
0x1912   :  { %3827 = vmatprep.subr.mxu0 %v3909_v9 }
0x1913   :  { %3828 = vmatpush3.msra.mxu0 %v3016_v19 }
0x1914   :  { %3829 = vmatprep.subr.mxu0 %v3909_v9 }
0x1915   :  { %3830 = vmatpush3.msra.mxu0 %v3015_v41 }
0x1916   :  { %3831 = vmatprep.subr.mxu0 %v3909_v9 }
0x1917   :  { %3832 = vmatpush3.msra.mxu0 %v3014_v43 }
0x19cc   :  { %v3001_v44 = vpop.f32.mrf.mxu0 }
0x19cd   :  { %v3005_v45 = vmul.f32 %v3001_v44, %v3001_v44 }
0x19ce   :  { %v3817_v46 = vpop.f32.mrf.mxu0 }
0x19cf   :  { %v3006_v47 = vmul.f32 %v3005_v45, %v3001_v44 }
0x19d0   :  { %v3099_v57 = vpop.f32.mrf.mxu0 }
0x19d1   :  { %v3007_v48 = vmul.f32 0.044715, %v3006_v47 }
0x19d2   :  { %v3824_v58 = vpop.f32.mrf.mxu0 }
0x19d3   :  { %v3008_v49 = vadd.f32 %v3007_v48, %v3001_v44 }
0x19d5   :  { %v3009_v50 = vmul.f32 0.7978846, %v3008_v49 }
0x19d7   :  { %3903 = vtanh.f32 %v3009_v50 }
0x19e4   :  { %v3904_v51 = vpop.eup %3903 }
0x19e5   :  { %v3011_v52 = vadd.f32 1.0, %v3904_v51 }
0x19e7   :  { %v3012_v53 = vmul.f32 0.5, %v3011_v52 }
0x19e9   :  { %v3013_v56 = vmul.f32 %v3012_v53, %v3001_v44 }
0x19eb   :  { %3834 = vmatmul.mubr.msk.f32.vlgmr.msra.gmra.mxu0 %vm134_vm2, %v3013_v56 }
0x1aab   :  { %v3172_v61 = vpop.f32.mrf.mxu0 }
0x1aac   :  { %v3173_v55 = vadd.f32 %v3172_v61, %v3099_v57 }
0x1aad   :  { %v3835_v54 = vpop.f32.mrf.mxu0 }
0x1aae   :  { %v3181_v0 = vadd.f32 %v3317_v62, %v3173_v55 }
0x1ab0   :  { %v3183_v1 = vmul.f32 %v3181_v0, %v3181_v0 }
0x1ab2   :  { %v3184_v3 = vmul.f32 %v3183_v1, %v3181_v0 }
0x1ab4   :  { %v3185_v4 = vmul.f32 0.044715, %v3184_v3 }
0x1ab6   :  { %v3186_v5 = vadd.f32 %v3185_v4, %v3181_v0 }
0x1ab8   :  { %v3187_v6 = vmul.f32 0.7978846, %v3186_v5 }
0x1aba   :  { %3905 = vtanh.f32 %v3187_v6 }
0x1ac7   :  { %v3906_v7 = vpop.eup %3905 }
0x1ac8   :  { %v3189_v8 = vadd.f32 1.0, %v3906_v7 }
0x1aca   :  { %v3190_v9 = vmul.f32 0.5, %v3189_v8 }
0x1acc   :  { %v3191_v11 = vmul.f32 %v3190_v9, %v3181_v0 }
0x1ace   :  { %v3196_v12 = vmul.f32 %v3318_v10, %v3191_v11 }
0x1ad0   :  { %v3198_v13 = vsel %vm3197_vm12, %v3196_v12, 0.0 }
0x1ad1   :  { %3199 = vadd.xlane.f32.xlu0 %v3198_v13 }
0x1b5a   :  { %v3200_v2 = vpop.xlane.xlu0 %3199 }
0x1b5b   :  { %v3210_v63 = vadd.f32 %v3209_v15, %v3200_v2 }
0x1b5d   :  { %3212 = vst.msk [vmem:[%s4556_s6] sm:$0x3] %vm3211_vm13, %v3210_v63 }

</bundles_post_ra>
